<compile_context>
chip_gen: v7x
topology: tpu7x:2x2x1
jax: 0.10.0
libtpu: 0.0.40
codegen_flags: <defaults>
</compile_context>

<pallas_src>
import functools

import numpy as np
import jax
import jax.numpy as jnp
from jax import lax
from jax.experimental import pallas as pl
from jax.experimental.pallas import tpu as pltpu

NEG_SLOPE = 1.0            # float(True) -- exact semantics of nn.LeakyReLU(True)
EPS = 1e-5                 # BatchNorm2d default
LANE = 128                 # TPU lane width; channel dims padded to this inside kernels
VMEM_LIMIT = 32 * 1024 * 1024


def _round_up(x, m):
    return (x + m - 1) // m * m


def _maybe_leaky(x):
    # slope == 1.0 -> identity: skip the elementwise pass entirely at trace time.
    if NEG_SLOPE == 1.0:
        return x
    return jnp.where(x >= 0, x, NEG_SLOPE * x)


# ---------------------------------------------------------------------------
# Single fused kernel: (conv1∘conv2 || shortcut) matmul -> conv3 (9 accumulated
# matmuls over a sublane-aligned zero-halo scratch) -> BatchNorm (batch stats).
# ---------------------------------------------------------------------------
def resblock_kernel(N, Ho, Wo, Cp,
                    patches_ref,   # [Mt, 9*Cin]   im2col patches (3x3, stride s, pad 1)
                    wA_ref,        # [9*Cin, 2*Cp] (conv1@conv2 fold) || shortcut weights
                    bsc_ref,       # [1, Cp]       shortcut bias (zero-padded)
                    w3_ref,        # [9, Cp, Cp]   conv3 per-tap weights (zero-padded)
                    gamma_ref,     # [1, Cp]       BN gamma (zero-padded)
                    beta_ref,      # [1, Cp]       BN beta  (zero-padded)
                    out_ref,       # [Mt, Cp]      normalized output (lane-dense)
                    pad_ref):      # VMEM scratch [N, Ho+2, Wp, Cp], Wp = roundup(Wo+2, 8)
    Mt = N * Ho * Wo

    # conv1 -> LeakyReLU(1.0) -> conv2 is purely linear, pre-folded into wA; fused with
    # the 3x3 shortcut conv into ONE MXU matmul over the shared im2col patches.
    hA = jnp.dot(patches_ref[...], wA_ref[...], preferred_element_type=jnp.float32)
    h2 = _maybe_leaky(hA[:, :Cp])            # conv path after conv2 (lane group 0)
    sc = hA[:, Cp:] + bsc_ref[...]           # shortcut + bias      (lane group 1)

    # conv3 (3x3, stride 1, pad 1): zero-halo scratch with sublane-aligned width, then
    # nine accumulated [Mt,Cp]x[Cp,Cp] matmuls -- no [Mt, 9*Cp] concat, no vreg spills.
    pad_ref[...] = jnp.zeros_like(pad_ref)
    pad_ref[:, 1:Ho + 1, 1:Wo + 1, :] = h2.reshape(N, Ho, Wo, Cp)
    y = sc
    for kh in range(3):
        for kw in range(3):
            tap = pad_ref[:, kh:kh + Ho, kw:kw + Wo, :].reshape(Mt, Cp)
            y = y + jnp.dot(tap, w3_ref[kh * 3 + kw],
                            preferred_element_type=jnp.float32)

    # norm: LeakyReLU(1.0) == identity; training-mode BatchNorm over the full batch,
    # biased variance, centered two-pass (safer than E[y^2]-E[y]^2), applied in-kernel.
    y = _maybe_leaky(y)
    inv_cnt = 1.0 / Mt
    mean = jnp.sum(y, axis=0, keepdims=True) * inv_cnt          # [1, Cp]
    d = y - mean
    var = jnp.sum(d * d, axis=0, keepdims=True) * inv_cnt
    scale = gamma_ref[...] * lax.rsqrt(var + EPS)               # padded lanes: gamma=0
    out_ref[...] = d * scale + beta_ref[...]


# ---------------------------------------------------------------------------
# One-time parameter packing (hoisted out of the per-call forward path).
# ---------------------------------------------------------------------------
def pack_params(params, stride):
    w1, w2, w3, ws, bs, gamma, beta = params          # HWIO weight layouts
    del stride
    Cin, C1 = w1.shape[2], w1.shape[3]
    Cout = w2.shape[3]
    Cp = _round_up(Cout, LANE)

    if NEG_SLOPE != 1.0:
        # TODO(synk): a non-identity activation between conv1/conv2 forbids the fold;
        # would need the unfused two-matmul path.
        raise NotImplementedError("conv1*conv2 fold requires negative_slope == 1.0")

    # Fold conv2 (1x1) through the identity activation into conv1 (exact up to f32
    # reassociation); HIGHEST precision so the fold itself adds no bf16 rounding.
    w12 = jnp.dot(w1.astype(jnp.float32).reshape(9 * Cin, C1),
                  w2.astype(jnp.float32).reshape(C1, Cout),
                  precision=lax.Precision.HIGHEST)

    wA = jnp.zeros((9 * Cin, 2 * Cp), jnp.float32)
    wA = wA.at[:, :Cout].set(w12)                                 # conv path
    wA = wA.at[:, Cp:Cp + Cout].set(ws.reshape(9 * Cin, Cout))    # shortcut
    bsc = jnp.zeros((1, Cp), jnp.float32).at[0, :Cout].set(bs)
    w3p = jnp.zeros((9, Cp, Cp), jnp.float32).at[:, :Cout, :Cout].set(
        w3.reshape(9, Cout, Cout))
    gammap = jnp.zeros((1, Cp), jnp.float32).at[0, :Cout].set(gamma)
    betap = jnp.zeros((1, Cp), jnp.float32).at[0, :Cout].set(beta)
    return wA, bsc, w3p, gammap, betap


def _im2col_3x3(x_nhwc, stride):
    """Wrapper-side im2col for the 3x3/stride/pad-1 convs (cheap at small Cin)."""
    N, H, W, Cin = x_nhwc.shape
    Ho = (H - 1) // stride + 1
    Wo = (W - 1) // stride + 1
    xp = jnp.pad(x_nhwc, ((0, 0), (1, 1), (1, 1), (0, 0)))
    taps = []
    for kh in range(3):
        for kw in range(3):
            taps.append(xp[:, kh:kh + (Ho - 1) * stride + 1:stride,
                           kw:kw + (Wo - 1) * stride + 1:stride, :])
    patches = jnp.concatenate(taps, axis=-1)          # [N, Ho, Wo, 9*Cin] tap-major
    return patches.reshape(N * Ho * Wo, 9 * Cin), Ho, Wo


def resblock_forward(x_nchw, packed, stride, out_channel):
    wA, bsc, w3p, gammap, betap = packed
    N = x_nchw.shape[0]
    Cp = wA.shape[1] // 2

    # NCHW -> NHWC, then wrapper im2col: patches arrive lane-contiguous, no in-kernel
    # narrow-lane tap concatenation.
    # TODO(synk): for large Cin switch back to a phase-decomposed in-kernel im2col.
    x = jnp.transpose(x_nchw, (0, 2, 3, 1)).astype(jnp.float32)
    patches, Ho, Wo = _im2col_3x3(x, stride)
    Mt = N * Ho * Wo
    KA = patches.shape[1]
    Wp = _round_up(Wo + 2, 8)                         # sublane-aligned halo width

    kernel = functools.partial(resblock_kernel, N, Ho, Wo, Cp)
    flops = 2 * Mt * KA * (2 * Cp) + 9 * 2 * Mt * Cp * Cp + 8 * Mt * Cp
    bytes_accessed = 4 * (Mt * KA + KA * 2 * Cp + Cp + 9 * Cp * Cp + 2 * Cp + Mt * Cp)

    # One pallas_call, one grid step: whole batch folded into M, BN fused in-kernel.
    # (Weights are fetched exactly once since the grid has a single step, so deeper
    #  multi-buffering is moot; use pipeline_mode=pl.Buffered(1) if this gets tiled.)
    out = pl.pallas_call(
        kernel,
        grid=(1,),
        in_specs=[
            pl.BlockSpec((Mt, KA), lambda i: (0, 0)),
            pl.BlockSpec((KA, 2 * Cp), lambda i: (0, 0)),
            pl.BlockSpec((1, Cp), lambda i: (0, 0)),
            pl.BlockSpec((9, Cp, Cp), lambda i: (0, 0, 0)),
            pl.BlockSpec((1, Cp), lambda i: (0, 0)),
            pl.BlockSpec((1, Cp), lambda i: (0, 0)),
        ],
        out_specs=pl.BlockSpec((Mt, Cp), lambda i: (0, 0)),
        out_shape=jax.ShapeDtypeStruct((Mt, Cp), jnp.float32),
        scratch_shapes=[pltpu.VMEM((N, Ho + 2, Wp, Cp), jnp.float32)],
        compiler_params=pltpu.CompilerParams(
            dimension_semantics=("arbitrary",),
            vmem_limit_bytes=VMEM_LIMIT),
        cost_estimate=pl.CostEstimate(flops=flops, transcendentals=Cp,
                                      bytes_accessed=bytes_accessed),
    )(patches, wA, bsc, w3p, gammap, betap)

    # strip channel padding, back to PyTorch's NCHW
    out = out[:, :out_channel].reshape(N, Ho, Wo, out_channel)
    return jnp.transpose(out, (0, 3, 1, 2))


def resblock_ref(x_nchw, params, stride):
    """Pure-JAX reference (lax.conv, f32 HIGHEST) for correctness checking."""
    w1, w2, w3, ws, bs, gamma, beta = params

    def conv(x, w_hwio, s, pad):
        return lax.conv_general_dilated(
            x, jnp.transpose(w_hwio, (3, 2, 0, 1)),
            window_strides=(s, s), padding=[(pad, pad), (pad, pad)],
            dimension_numbers=('NCHW', 'OIHW', 'NCHW'),
            precision=lax.Precision.HIGHEST)

    def leaky(v):
        return jnp.where(v >= 0, v, NEG_SLOPE * v)

    h = leaky(conv(x_nchw, w1, stride, 1))
    h = leaky(conv(h, w2, 1, 0))
    h = conv(h, w3, 1, 1)
    s = conv(x_nchw, ws, stride, 1) + bs.reshape(1, -1, 1, 1)
    out = leaky(h + s)
    mean = out.mean(axis=(0, 2, 3), keepdims=True)
    var = ((out - mean) ** 2).mean(axis=(0, 2, 3), keepdims=True)
    xhat = (out - mean) / jnp.sqrt(var + EPS)
    return gamma.reshape(1, -1, 1, 1) * xhat + beta.reshape(1, -1, 1, 1)


if __name__ == "__main__":
    in_channel, out_channel, stride = 4, 8, 2
    N, H, W = 2, 16, 16
    C1 = in_channel * stride

    key = jax.random.PRNGKey(0)
    keys = jax.random.split(key, 6)
    scale = 0.2
    # Deterministic synthetic parameters (shapes follow ResBlock.__init__), HWIO layout.
    w1 = scale * jax.random.normal(keys[0], (3, 3, in_channel, C1), jnp.float32)
    w2 = scale * jax.random.normal(keys[1], (1, 1, C1, out_channel), jnp.float32)
    w3 = scale * jax.random.normal(keys[2], (3, 3, out_channel, out_channel), jnp.float32)
    ws = scale * jax.random.normal(keys[3], (3, 3, in_channel, out_channel), jnp.float32)
    bs = scale * jax.random.normal(keys[4], (out_channel,), jnp.float32)
    gamma = jnp.ones((out_channel,), jnp.float32)    # BatchNorm2d default init
    beta = jnp.zeros((out_channel,), jnp.float32)
    params = (w1, w2, w3, ws, bs, gamma, beta)

    x = jax.random.normal(keys[5], (N, in_channel, H, W), jnp.float32)

    packed = pack_params(params, stride)             # once per parameter set
    fwd = jax.jit(resblock_forward, static_argnums=(2, 3))
    out = fwd(x, packed, stride, out_channel)
    jax.block_until_ready(out)
    assert out.shape == (N, out_channel, H // stride, W // stride)

    ref = resblock_ref(x, params, stride)
    np.testing.assert_allclose(np.asarray(out), np.asarray(ref), atol=2e-3, rtol=2e-3)

    print("KERNEL_OK")
</pallas_src>

<mosaic_0001>
module attributes {stable_mosaic.version = 11 : i64} {
  func.func @resblock_kernel(%arg0: i32, %arg1: memref<128x36xf32, #tpu.memory_space<vmem>>, %arg2: memref<36x256xf32, #tpu.memory_space<vmem>>, %arg3: memref<1x128xf32, #tpu.memory_space<vmem>>, %arg4: memref<9x128x128xf32, #tpu.memory_space<vmem>>, %arg5: memref<1x128xf32, #tpu.memory_space<vmem>>, %arg6: memref<1x128xf32, #tpu.memory_space<vmem>>, %arg7: memref<128x128xf32, #tpu.memory_space<vmem>>, %arg8: memref<2x10x16x128xf32, #tpu.memory_space<vmem>>) attributes {dimension_semantics = [#tpu.dimension_semantics<arbitrary>], iteration_bounds = array<i64: 1>, scalar_prefetch = 0 : i64, scratch_operands = 1 : i64, tpu.core_type = #tpu.core_type<tc>, window_params = [{pipeline_mode = #tpu.pipeline_mode<synchronous>, transform_indices = @transform_0, window_bounds = array<i64: 128, 36>}, {pipeline_mode = #tpu.pipeline_mode<synchronous>, transform_indices = @transform_1, window_bounds = array<i64: 36, 256>}, {pipeline_mode = #tpu.pipeline_mode<synchronous>, transform_indices = @transform_2, window_bounds = array<i64: 1, 128>}, {pipeline_mode = #tpu.pipeline_mode<synchronous>, transform_indices = @transform_3, window_bounds = array<i64: 9, 128, 128>}, {pipeline_mode = #tpu.pipeline_mode<synchronous>, transform_indices = @transform_4, window_bounds = array<i64: 1, 128>}, {pipeline_mode = #tpu.pipeline_mode<synchronous>, transform_indices = @transform_5, window_bounds = array<i64: 1, 128>}, {pipeline_mode = #tpu.pipeline_mode<synchronous>, transform_indices = @transform_6, window_bounds = array<i64: 128, 128>}]} {
    %c0 = arith.constant 0 : index
    %c0_0 = arith.constant 0 : index
    %0 = vector.load %arg1[%c0, %c0_0] : memref<128x36xf32, #tpu.memory_space<vmem>>, vector<128x36xf32>
    %c0_1 = arith.constant 0 : index
    %c0_2 = arith.constant 0 : index
    %1 = vector.load %arg2[%c0_1, %c0_2] : memref<36x256xf32, #tpu.memory_space<vmem>>, vector<36x256xf32>
    %cst = arith.constant dense<0.000000e+00> : vector<128x256xf32>
    %2 = tpu.matmul %0, %1, %cst {dimension_numbers = #tpu.dot_dimension_numbers<[1], [0], [0], [1], [0, 0, 1, 1], [], []>} : vector<128x36xf32>, vector<36x256xf32>, vector<128x256xf32> -> vector<128x256xf32>
    %3 = vector.extract_strided_slice %2 {offsets = [0, 0], sizes = [128, 128], strides = [1, 1]} : vector<128x256xf32> to vector<128x128xf32>
    %4 = vector.extract_strided_slice %2 {offsets = [0, 128], sizes = [128, 128], strides = [1, 1]} : vector<128x256xf32> to vector<128x128xf32>
    %c0_3 = arith.constant 0 : index
    %c0_4 = arith.constant 0 : index
    %5 = vector.load %arg3[%c0_3, %c0_4] : memref<1x128xf32, #tpu.memory_space<vmem>>, vector<1x128xf32>
    %6 = vector.broadcast %5 : vector<1x128xf32> to vector<128x128xf32>
    %7 = arith.addf %4, %6 : vector<128x128xf32>
    %cst_5 = arith.constant 0.000000e+00 : f32
    %8 = vector.broadcast %cst_5 : f32 to vector<2x10x16x128xf32>
    %c0_6 = arith.constant 0 : index
    %c0_7 = arith.constant 0 : index
    %c0_8 = arith.constant 0 : index
    %c0_9 = arith.constant 0 : index
    %9 = vector.load %arg8[%c0_6, %c0_7, %c0_8, %c0_9] : memref<2x10x16x128xf32, #tpu.memory_space<vmem>>, vector<2x10x16x128xf32>
    tpu.vector_store %arg8[%c0_6, %c0_7, %c0_8, %c0_9], %8 {strides = array<i32>} : memref<2x10x16x128xf32, #tpu.memory_space<vmem>>, vector<2x10x16x128xf32>,
    %10 = vector.shape_cast %3 : vector<128x128xf32> to vector<2x8x8x128xf32>
    %c0_10 = arith.constant 0 : index
    %c1 = arith.constant 1 : index
    %c1_11 = arith.constant 1 : index
    %c0_12 = arith.constant 0 : index
    %11 = vector.load %arg8[%c0_10, %c1, %c1_11, %c0_12] : memref<2x10x16x128xf32, #tpu.memory_space<vmem>>, vector<2x8x8x128xf32>
    tpu.vector_store %arg8[%c0_10, %c1, %c1_11, %c0_12], %10 {strides = array<i32>} : memref<2x10x16x128xf32, #tpu.memory_space<vmem>>, vector<2x8x8x128xf32>,
    %c0_13 = arith.constant 0 : index
    %c0_14 = arith.constant 0 : index
    %c0_15 = arith.constant 0 : index
    %c0_16 = arith.constant 0 : index
    %12 = vector.load %arg8[%c0_13, %c0_14, %c0_15, %c0_16] : memref<2x10x16x128xf32, #tpu.memory_space<vmem>>, vector<2x8x8x128xf32>
    %13 = vector.shape_cast %12 : vector<2x8x8x128xf32> to vector<128x128xf32>
    %c0_17 = arith.constant 0 : index
    %c0_18 = arith.constant 0 : index
    %c0_19 = arith.constant 0 : index
    %14 = vector.load %arg4[%c0_17, %c0_18, %c0_19] : memref<9x128x128xf32, #tpu.memory_space<vmem>>, vector<1x128x128xf32>
    %15 = vector.shape_cast %14 : vector<1x128x128xf32> to vector<128x128xf32>
    %cst_20 = arith.constant dense<0.000000e+00> : vector<128x128xf32>
    %16 = tpu.matmul %13, %15, %cst_20 {dimension_numbers = #tpu.dot_dimension_numbers<[1], [0], [0], [1], [0, 0, 1, 1], [], []>} : vector<128x128xf32>, vector<128x128xf32>, vector<128x128xf32> -> vector<128x128xf32>
    %17 = arith.addf %7, %16 : vector<128x128xf32>
    %c0_21 = arith.constant 0 : index
    %c0_22 = arith.constant 0 : index
    %c1_23 = arith.constant 1 : index
    %c0_24 = arith.constant 0 : index
    %18 = vector.load %arg8[%c0_21, %c0_22, %c1_23, %c0_24] : memref<2x10x16x128xf32, #tpu.memory_space<vmem>>, vector<2x8x8x128xf32>
    %19 = vector.shape_cast %18 : vector<2x8x8x128xf32> to vector<128x128xf32>
    %c1_25 = arith.constant 1 : index
    %c0_26 = arith.constant 0 : index
    %c0_27 = arith.constant 0 : index
    %20 = vector.load %arg4[%c1_25, %c0_26, %c0_27] : memref<9x128x128xf32, #tpu.memory_space<vmem>>, vector<1x128x128xf32>
    %21 = vector.shape_cast %20 : vector<1x128x128xf32> to vector<128x128xf32>
    %cst_28 = arith.constant dense<0.000000e+00> : vector<128x128xf32>
    %22 = tpu.matmul %19, %21, %cst_28 {dimension_numbers = #tpu.dot_dimension_numbers<[1], [0], [0], [1], [0, 0, 1, 1], [], []>} : vector<128x128xf32>, vector<128x128xf32>, vector<128x128xf32> -> vector<128x128xf32>
    %23 = arith.addf %17, %22 : vector<128x128xf32>
    %c0_29 = arith.constant 0 : index
    %c0_30 = arith.constant 0 : index
    %c2 = arith.constant 2 : index
    %c0_31 = arith.constant 0 : index
    %24 = vector.load %arg8[%c0_29, %c0_30, %c2, %c0_31] : memref<2x10x16x128xf32, #tpu.memory_space<vmem>>, vector<2x8x8x128xf32>
    %25 = vector.shape_cast %24 : vector<2x8x8x128xf32> to vector<128x128xf32>
    %c2_32 = arith.constant 2 : index
    %c0_33 = arith.constant 0 : index
    %c0_34 = arith.constant 0 : index
    %26 = vector.load %arg4[%c2_32, %c0_33, %c0_34] : memref<9x128x128xf32, #tpu.memory_space<vmem>>, vector<1x128x128xf32>
    %27 = vector.shape_cast %26 : vector<1x128x128xf32> to vector<128x128xf32>
    %cst_35 = arith.constant dense<0.000000e+00> : vector<128x128xf32>
    %28 = tpu.matmul %25, %27, %cst_35 {dimension_numbers = #tpu.dot_dimension_numbers<[1], [0], [0], [1], [0, 0, 1, 1], [], []>} : vector<128x128xf32>, vector<128x128xf32>, vector<128x128xf32> -> vector<128x128xf32>
    %29 = arith.addf %23, %28 : vector<128x128xf32>
    %c0_36 = arith.constant 0 : index
    %c1_37 = arith.constant 1 : index
    %c0_38 = arith.constant 0 : index
    %c0_39 = arith.constant 0 : index
    %30 = vector.load %arg8[%c0_36, %c1_37, %c0_38, %c0_39] : memref<2x10x16x128xf32, #tpu.memory_space<vmem>>, vector<2x8x8x128xf32>
    %31 = vector.shape_cast %30 : vector<2x8x8x128xf32> to vector<128x128xf32>
    %c3 = arith.constant 3 : index
    %c0_40 = arith.constant 0 : index
    %c0_41 = arith.constant 0 : index
    %32 = vector.load %arg4[%c3, %c0_40, %c0_41] : memref<9x128x128xf32, #tpu.memory_space<vmem>>, vector<1x128x128xf32>
    %33 = vector.shape_cast %32 : vector<1x128x128xf32> to vector<128x128xf32>
    %cst_42 = arith.constant dense<0.000000e+00> : vector<128x128xf32>
    %34 = tpu.matmul %31, %33, %cst_42 {dimension_numbers = #tpu.dot_dimension_numbers<[1], [0], [0], [1], [0, 0, 1, 1], [], []>} : vector<128x128xf32>, vector<128x128xf32>, vector<128x128xf32> -> vector<128x128xf32>
    %35 = arith.addf %29, %34 : vector<128x128xf32>
    %c0_43 = arith.constant 0 : index
    %c1_44 = arith.constant 1 : index
    %c1_45 = arith.constant 1 : index
    %c0_46 = arith.constant 0 : index
    %36 = vector.load %arg8[%c0_43, %c1_44, %c1_45, %c0_46] : memref<2x10x16x128xf32, #tpu.memory_space<vmem>>, vector<2x8x8x128xf32>
    %37 = vector.shape_cast %36 : vector<2x8x8x128xf32> to vector<128x128xf32>
    %c4 = arith.constant 4 : index
    %c0_47 = arith.constant 0 : index
    %c0_48 = arith.constant 0 : index
    %38 = vector.load %arg4[%c4, %c0_47, %c0_48] : memref<9x128x128xf32, #tpu.memory_space<vmem>>, vector<1x128x128xf32>
    %39 = vector.shape_cast %38 : vector<1x128x128xf32> to vector<128x128xf32>
    %cst_49 = arith.constant dense<0.000000e+00> : vector<128x128xf32>
    %40 = tpu.matmul %37, %39, %cst_49 {dimension_numbers = #tpu.dot_dimension_numbers<[1], [0], [0], [1], [0, 0, 1, 1], [], []>} : vector<128x128xf32>, vector<128x128xf32>, vector<128x128xf32> -> vector<128x128xf32>
    %41 = arith.addf %35, %40 : vector<128x128xf32>
    %c0_50 = arith.constant 0 : index
    %c1_51 = arith.constant 1 : index
    %c2_52 = arith.constant 2 : index
    %c0_53 = arith.constant 0 : index
    %42 = vector.load %arg8[%c0_50, %c1_51, %c2_52, %c0_53] : memref<2x10x16x128xf32, #tpu.memory_space<vmem>>, vector<2x8x8x128xf32>
    %43 = vector.shape_cast %42 : vector<2x8x8x128xf32> to vector<128x128xf32>
    %c5 = arith.constant 5 : index
    %c0_54 = arith.constant 0 : index
    %c0_55 = arith.constant 0 : index
    %44 = vector.load %arg4[%c5, %c0_54, %c0_55] : memref<9x128x128xf32, #tpu.memory_space<vmem>>, vector<1x128x128xf32>
    %45 = vector.shape_cast %44 : vector<1x128x128xf32> to vector<128x128xf32>
    %cst_56 = arith.constant dense<0.000000e+00> : vector<128x128xf32>
    %46 = tpu.matmul %43, %45, %cst_56 {dimension_numbers = #tpu.dot_dimension_numbers<[1], [0], [0], [1], [0, 0, 1, 1], [], []>} : vector<128x128xf32>, vector<128x128xf32>, vector<128x128xf32> -> vector<128x128xf32>
    %47 = arith.addf %41, %46 : vector<128x128xf32>
    %c0_57 = arith.constant 0 : index
    %c2_58 = arith.constant 2 : index
    %c0_59 = arith.constant 0 : index
    %c0_60 = arith.constant 0 : index
    %48 = vector.load %arg8[%c0_57, %c2_58, %c0_59, %c0_60] : memref<2x10x16x128xf32, #tpu.memory_space<vmem>>, vector<2x8x8x128xf32>
    %49 = vector.shape_cast %48 : vector<2x8x8x128xf32> to vector<128x128xf32>
    %c6 = arith.constant 6 : index
    %c0_61 = arith.constant 0 : index
    %c0_62 = arith.constant 0 : index
    %50 = vector.load %arg4[%c6, %c0_61, %c0_62] : memref<9x128x128xf32, #tpu.memory_space<vmem>>, vector<1x128x128xf32>
    %51 = vector.shape_cast %50 : vector<1x128x128xf32> to vector<128x128xf32>
    %cst_63 = arith.constant dense<0.000000e+00> : vector<128x128xf32>
    %52 = tpu.matmul %49, %51, %cst_63 {dimension_numbers = #tpu.dot_dimension_numbers<[1], [0], [0], [1], [0, 0, 1, 1], [], []>} : vector<128x128xf32>, vector<128x128xf32>, vector<128x128xf32> -> vector<128x128xf32>
    %53 = arith.addf %47, %52 : vector<128x128xf32>
    %c0_64 = arith.constant 0 : index
    %c2_65 = arith.constant 2 : index
    %c1_66 = arith.constant 1 : index
    %c0_67 = arith.constant 0 : index
    %54 = vector.load %arg8[%c0_64, %c2_65, %c1_66, %c0_67] : memref<2x10x16x128xf32, #tpu.memory_space<vmem>>, vector<2x8x8x128xf32>
    %55 = vector.shape_cast %54 : vector<2x8x8x128xf32> to vector<128x128xf32>
    %c7 = arith.constant 7 : index
    %c0_68 = arith.constant 0 : index
    %c0_69 = arith.constant 0 : index
    %56 = vector.load %arg4[%c7, %c0_68, %c0_69] : memref<9x128x128xf32, #tpu.memory_space<vmem>>, vector<1x128x128xf32>
    %57 = vector.shape_cast %56 : vector<1x128x128xf32> to vector<128x128xf32>
    %cst_70 = arith.constant dense<0.000000e+00> : vector<128x128xf32>
    %58 = tpu.matmul %55, %57, %cst_70 {dimension_numbers = #tpu.dot_dimension_numbers<[1], [0], [0], [1], [0, 0, 1, 1], [], []>} : vector<128x128xf32>, vector<128x128xf32>, vector<128x128xf32> -> vector<128x128xf32>
    %59 = arith.addf %53, %58 : vector<128x128xf32>
    %c0_71 = arith.constant 0 : index
    %c2_72 = arith.constant 2 : index
    %c2_73 = arith.constant 2 : index
    %c0_74 = arith.constant 0 : index
    %60 = vector.load %arg8[%c0_71, %c2_72, %c2_73, %c0_74] : memref<2x10x16x128xf32, #tpu.memory_space<vmem>>, vector<2x8x8x128xf32>
    %61 = vector.shape_cast %60 : vector<2x8x8x128xf32> to vector<128x128xf32>
    %c8 = arith.constant 8 : index
    %c0_75 = arith.constant 0 : index
    %c0_76 = arith.constant 0 : index
    %62 = vector.load %arg4[%c8, %c0_75, %c0_76] : memref<9x128x128xf32, #tpu.memory_space<vmem>>, vector<1x128x128xf32>
    %63 = vector.shape_cast %62 : vector<1x128x128xf32> to vector<128x128xf32>
    %cst_77 = arith.constant dense<0.000000e+00> : vector<128x128xf32>
    %64 = tpu.matmul %61, %63, %cst_77 {dimension_numbers = #tpu.dot_dimension_numbers<[1], [0], [0], [1], [0, 0, 1, 1], [], []>} : vector<128x128xf32>, vector<128x128xf32>, vector<128x128xf32> -> vector<128x128xf32>
    %65 = arith.addf %59, %64 : vector<128x128xf32>
    %cst_78 = arith.constant dense<0.000000e+00> : vector<128xf32>
    %66 = vector.multi_reduction <add>, %65, %cst_78 [0] : vector<128x128xf32> to vector<128xf32>
    %67 = vector.shape_cast %66 : vector<128xf32> to vector<1x128xf32>
    %cst_79 = arith.constant 7.812500e-03 : f32
    %68 = vector.broadcast %cst_79 : f32 to vector<1x128xf32>
    %69 = arith.mulf %67, %68 : vector<1x128xf32>
    %70 = vector.broadcast %69 : vector<1x128xf32> to vector<128x128xf32>
    %71 = arith.subf %65, %70 : vector<128x128xf32>
    %72 = arith.mulf %71, %71 : vector<128x128xf32>
    %cst_80 = arith.constant dense<0.000000e+00> : vector<128xf32>
    %73 = vector.multi_reduction <add>, %72, %cst_80 [0] : vector<128x128xf32> to vector<128xf32>
    %74 = vector.shape_cast %73 : vector<128xf32> to vector<1x128xf32>
    %cst_81 = arith.constant 7.812500e-03 : f32
    %75 = vector.broadcast %cst_81 : f32 to vector<1x128xf32>
    %76 = arith.mulf %74, %75 : vector<1x128xf32>
    %c0_82 = arith.constant 0 : index
    %c0_83 = arith.constant 0 : index
    %77 = vector.load %arg5[%c0_82, %c0_83] : memref<1x128xf32, #tpu.memory_space<vmem>>, vector<1x128xf32>
    %cst_84 = arith.constant 9.99999974E-6 : f32
    %78 = vector.broadcast %cst_84 : f32 to vector<1x128xf32>
    %79 = arith.addf %76, %78 : vector<1x128xf32>
    %80 = math.rsqrt %79 : vector<1x128xf32>
    %81 = arith.mulf %77, %80 : vector<1x128xf32>
    %82 = vector.broadcast %81 : vector<1x128xf32> to vector<128x128xf32>
    %83 = arith.mulf %71, %82 : vector<128x128xf32>
    %c0_85 = arith.constant 0 : index
    %c0_86 = arith.constant 0 : index
    %84 = vector.load %arg6[%c0_85, %c0_86] : memref<1x128xf32, #tpu.memory_space<vmem>>, vector<1x128xf32>
    %85 = vector.broadcast %84 : vector<1x128xf32> to vector<128x128xf32>
    %86 = arith.addf %83, %85 : vector<128x128xf32>
    %c0_87 = arith.constant 0 : index
    %c0_88 = arith.constant 0 : index
    %87 = vector.load %arg7[%c0_87, %c0_88] : memref<128x128xf32, #tpu.memory_space<vmem>>, vector<128x128xf32>
    tpu.vector_store %arg7[%c0_87, %c0_88], %86 {strides = array<i32>} : memref<128x128xf32, #tpu.memory_space<vmem>>, vector<128x128xf32>,
    return
  }
  func.func @transform_0(%arg0: i32) -> (i32, i32) {
    %c0_i32 = arith.constant 0 : i32
    %c0_i32_0 = arith.constant 0 : i32
    %c0_i32_1 = arith.constant 0 : i32
    return %c0_i32, %c0_i32_0 : i32, i32
  }
  func.func @transform_1(%arg0: i32) -> (i32, i32) {
    %c0_i32 = arith.constant 0 : i32
    %c0_i32_0 = arith.constant 0 : i32
    %c0_i32_1 = arith.constant 0 : i32
    return %c0_i32, %c0_i32_0 : i32, i32
  }
  func.func @transform_2(%arg0: i32) -> (i32, i32) {
    %c0_i32 = arith.constant 0 : i32
    %c0_i32_0 = arith.constant 0 : i32
    %c0_i32_1 = arith.constant 0 : i32
    return %c0_i32, %c0_i32_0 : i32, i32
  }
  func.func @transform_3(%arg0: i32) -> (i32, i32, i32) {
    %c0_i32 = arith.constant 0 : i32
    %c0_i32_0 = arith.constant 0 : i32
    %c0_i32_1 = arith.constant 0 : i32
    %c0_i32_2 = arith.constant 0 : i32
    return %c0_i32, %c0_i32_0, %c0_i32_1 : i32, i32, i32
  }
  func.func @transform_4(%arg0: i32) -> (i32, i32) {
    %c0_i32 = arith.constant 0 : i32
    %c0_i32_0 = arith.constant 0 : i32
    %c0_i32_1 = arith.constant 0 : i32
    return %c0_i32, %c0_i32_0 : i32, i32
  }
  func.func @transform_5(%arg0: i32) -> (i32, i32) {
    %c0_i32 = arith.constant 0 : i32
    %c0_i32_0 = arith.constant 0 : i32
    %c0_i32_1 = arith.constant 0 : i32
    return %c0_i32, %c0_i32_0 : i32, i32
  }
  func.func @transform_6(%arg0: i32) -> (i32, i32) {
    %c0_i32 = arith.constant 0 : i32
    %c0_i32_0 = arith.constant 0 : i32
    %c0_i32_1 = arith.constant 0 : i32
    return %c0_i32, %c0_i32_0 : i32, i32
  }
}

</mosaic_0001>

<bundles_post_ra>
// kernel: resblock_forward.1
= control target key start
LH: loop header
LB: loop body
LE: loop exit
PB: predicated region body
PF: predicated region fallthrough
CT: control target
= control target key end

     0   :  { %v3493_v3 = vmov 0.0   ;;  %vm98_vm0 = vcmask 1043456   ;;  %vm49_vm1 = vcmask 293888   ;;  %s4733_s1 = inlined_call_operand.vmem [shape: f32[36,256], index: 1, kind: input, shape index: {}]   ;;  %s4734_s0 = inlined_call_operand.vmem [shape: f32[128,36], index: 0, kind: input, shape index: {}]   ;;  %s4735_s3 = inlined_call_operand.vmem [shape: f32[9,128,128], index: 3, kind: input, shape index: {}]   ;;  %s4736_s2 = inlined_call_operand.vmem [shape: f32[1,128], index: 2, kind: input, shape index: {}]   ;;  %s4737_s4 = inlined_call_operand.vmem [shape: f32[1,128], index: 4, kind: input, shape index: {}]   ;;  %s4738_s5 = inlined_call_operand.vmem [shape: f32[1,128], index: 5, kind: input, shape index: {}]   ;;  %s4739_s6 = inlined_call_operand.vmem [shape: f32[128,128], index: 6, kind: output, shape index: {}]  }
   0x1   :  { %v40_v0 = vld [vmem:[%s4733_s1 + $0x8] sm:$0xff]  ;;  %v42_v1 = vld [vmem:[%s4733_s1 + $0x18] sm:$0xff]  ;;  %v39_v2 = vld [vmem:[%s4733_s1] sm:$0xff]  ;;  %169 = vmatprep.mubr.f32.mxu0 %v3493_v3  ;;  %289 = vst [vmem:[#allocation2] sm:$0xff] %v3493_v3  ;;  %2705 = vmatprep.mubr.f32.mxu1 %v3493_v3 }
   0x2   :  { %290 = vst [vmem:[#allocation2 + $0x8] sm:$0xff] %v3493_v3  ;;  %291 = vst [vmem:[#allocation2 + $0x10] sm:$0xff] %v3493_v3  ;;  %v3177_v4 = vpack.c.bf16 %v42_v1, %v40_v0  ;;  %v41_v5 = vld [vmem:[%s4733_s1 + $0x10] sm:$0xff]  ;;  %v44_v6 = vld [vmem:[%s4733_s1 + $0x28] sm:$0xff] }
   0x3   :  { %292 = vst [vmem:[#allocation2 + $0x18] sm:$0xff] %v3493_v3  ;;  %293 = vst [vmem:[#allocation2 + $0x20] sm:$0xff] %v3493_v3  ;;  %v46_v7 = vld [vmem:[%s4733_s1 + $0x38] sm:$0xff]  ;;  %v3179_v8 = vpack.c.bf16 %v41_v5, %v39_v2  ;;  %v43_v10 = vld [vmem:[%s4733_s1 + $0x20] sm:$0xff] }
   0x4   :  { %294 = vst [vmem:[#allocation2 + $0x28] sm:$0xff] %v3493_v3  ;;  %295 = vst [vmem:[#allocation2 + $0x30] sm:$0xff] %v3493_v3  ;;  %v3181_v9 = vpack.c.bf16 %v46_v7, %v44_v6  ;;  %v45_v11 = vld [vmem:[%s4733_s1 + $0x30] sm:$0xff]  ;;  %3178 = vmatprep.subr.bf16.mxu0 %v3177_v4  ;;  %v48_v13 = vld [vmem:[%s4733_s1 + $0x48] sm:$0xf] }
   0x5   :  { %296 = vst [vmem:[#allocation2 + $0x38] sm:$0xff] %v3493_v3  ;;  %297 = vst [vmem:[#allocation2 + $0x40] sm:$0xff] %v3493_v3  ;;  %3180 = vmatpush1.bf16.msra.mxu0 %v3179_v8  ;;  %v3183_v12 = vpack.c.bf16 %v45_v11, %v43_v10  ;;  %v47_v14 = vld [vmem:[%s4733_s1 + $0x40] sm:$0xf]  ;;  %v363_v17 = vld [vmem:[%s4735_s3 + $0x8] sm:$0xff] }
   0x6   :  { %298 = vst [vmem:[#allocation2 + $0x48] sm:$0xff] %v3493_v3  ;;  %299 = vst [vmem:[#allocation2 + $0x50] sm:$0xff] %v3493_v3  ;;  %3182 = vmatprep.subr.bf16.mxu0 %v3181_v9  ;;  %v23_v15 = vld [vmem:[%s4734_s0] sm:$0xff]  ;;  %v2273_v19 = vld [vmem:[%s4735_s3 + $0x108] sm:$0xff] }
   0x7   :  { %300 = vst [vmem:[#allocation2 + $0x58] sm:$0xff] %v3493_v3  ;;  %301 = vst [vmem:[#allocation2 + $0x60] sm:$0xff] %v3493_v3  ;;  %v362_v16 = vld [vmem:[%s4735_s3] sm:$0xff]  ;;  %v364_v22 = vld [vmem:[%s4735_s3 + $0x10] sm:$0xff] }
   0x8   :  { %302 = vst [vmem:[#allocation2 + $0x68] sm:$0xff] %v3493_v3  ;;  %303 = vst [vmem:[#allocation2 + $0x70] sm:$0xff] %v3493_v3  ;;  %v2272_v18 = vld [vmem:[%s4735_s3 + $0x100] sm:$0xff]  ;;  %v3185_v20 = vpack.c.bf16 %v363_v17, %v362_v16  ;;  %v365_v23 = vld [vmem:[%s4735_s3 + $0x18] sm:$0xff] }
   0x9   :  { %304 = vst [vmem:[#allocation2 + $0x78] sm:$0xff] %v3493_v3  ;;  %305 = vst [vmem:[#allocation2 + $0x80] sm:$0xff] %v3493_v3  ;;  %3184 = vmatpush1.bf16.msra.mxu0 %v3183_v12  ;;  %v3249_v21 = vpack.c.bf16 %v2273_v19, %v2272_v18  ;;  %v2274_v24 = vld [vmem:[%s4735_s3 + $0x110] sm:$0xff]  ;;  %v3189_v25 = vpack.c.bf16 %v365_v23, %v364_v22  ;;  %v2275_v26 = vld [vmem:[%s4735_s3 + $0x118] sm:$0xff] }
   0xa   :  { %306 = vst [vmem:[#allocation2 + $0x88] sm:$0xff] %v3493_v3  ;;  %307 = vst [vmem:[#allocation2 + $0x90] sm:$0xff] %v3493_v3  ;;  %2237 = vmatprep.subr.msk.mxu0 %vm98_vm0, %v48_v13  ;;  %3186 = vmatprep.subr.bf16.mxu1 %v3185_v20  ;;  %v3253_v27 = vpack.c.bf16 %v2275_v26, %v2274_v24  ;;  %v366_v28 = vld [vmem:[%s4735_s3 + $0x20] sm:$0xff]  ;;  %v367_v29 = vld [vmem:[%s4735_s3 + $0x28] sm:$0xff] }
   0xb   :  { %308 = vst [vmem:[#allocation2 + $0x98] sm:$0xff] %v3493_v3  ;;  %309 = vst [vmem:[#allocation2 + $0xa0] sm:$0xff] %v3493_v3  ;;  %v2276_v30 = vld [vmem:[%s4735_s3 + $0x120] sm:$0xff]  ;;  %v2277_v31 = vld [vmem:[%s4735_s3 + $0x128] sm:$0xff]  ;;  %3188 = vmatpush3.bf16.msra.mxu1 %v3185_v20  ;;  %v3193_v33 = vpack.c.bf16 %v367_v29, %v366_v28 }
   0xc   :  { %310 = vst [vmem:[#allocation2 + $0xa8] sm:$0xff] %v3493_v3  ;;  %311 = vst [vmem:[#allocation2 + $0xb0] sm:$0xff] %v3493_v3  ;;  %v24_v32 = vld [vmem:[%s4734_s0 + $0x8] sm:$0xff]  ;;  %3190 = vmatprep.subr.bf16.mxu1 %v3189_v25  ;;  %v3257_v34 = vpack.c.bf16 %v2277_v31, %v2276_v30  ;;  %v368_v35 = vld [vmem:[%s4735_s3 + $0x30] sm:$0xff] }
   0xd   :  { %312 = vst [vmem:[#allocation2 + $0xb8] sm:$0xff] %v3493_v3  ;;  %313 = vst [vmem:[#allocation2 + $0xc0] sm:$0xff] %v3493_v3  ;;  %2238 = vmatpush1.msk.msra.mxu0 %vm98_vm0, %v47_v14  ;;  %v369_v36 = vld [vmem:[%s4735_s3 + $0x38] sm:$0xff]  ;;  %v2278_v37 = vld [vmem:[%s4735_s3 + $0x130] sm:$0xff] }
   0xe   :  { %314 = vst [vmem:[#allocation2 + $0xc8] sm:$0xff] %v3493_v3  ;;  %315 = vst [vmem:[#allocation2 + $0xd0] sm:$0xff] %v3493_v3  ;;  %2239 = vmatmul.mubr.msk.f32.vlgmr.msra.gmra.mrb[0].mxu0 %vm49_vm1, %v23_v15  ;;  %3250 = vmatprep.subr.bf16.mxu0 %v3249_v21  ;;  %v2279_v38 = vld [vmem:[%s4735_s3 + $0x138] sm:$0xff]  ;;  %v25_v39 = vld [vmem:[%s4734_s0 + $0x10] sm:$0xff]  ;;  %v3197_v40 = vpack.c.bf16 %v369_v36, %v368_v35 }
   0xf   :  { %316 = vst [vmem:[#allocation2 + $0xd8] sm:$0xff] %v3493_v3  ;;  %317 = vst [vmem:[#allocation2 + $0xe0] sm:$0xff] %v3493_v3  ;;  %175 = vmatprep.mubr.f32.mxu0 %v3493_v3  ;;  %3252 = vmatpush3.bf16.msra.mxu0 %v3249_v21  ;;  %v3261_v41 = vpack.c.bf16 %v2279_v38, %v2278_v37  ;;  %v370_v42 = vld [vmem:[%s4735_s3 + $0x40] sm:$0xff]  ;;  %v371_v43 = vld [vmem:[%s4735_s3 + $0x48] sm:$0xff] }
  0x10   :  { %318 = vst [vmem:[#allocation2 + $0xe8] sm:$0xff] %v3493_v3  ;;  %319 = vst [vmem:[#allocation2 + $0xf0] sm:$0xff] %v3493_v3  ;;  %3254 = vmatprep.subr.bf16.mxu0 %v3253_v27  ;;  %3192 = vmatpush3.bf16.msra.mxu1 %v3189_v25  ;;  %v2280_v44 = vld [vmem:[%s4735_s3 + $0x140] sm:$0xff]  ;;  %v2281_v45 = vld [vmem:[%s4735_s3 + $0x148] sm:$0xff]  ;;  %v3201_v47 = vpack.c.bf16 %v371_v43, %v370_v42 }
  0x11   :  { %320 = vst [vmem:[#allocation2 + $0xf8] sm:$0xff] %v3493_v3  ;;  %321 = vst [vmem:[#allocation2 + $0x100] sm:$0xff] %v3493_v3  ;;  %3194 = vmatprep.subr.bf16.mxu1 %v3193_v33  ;;  %v26_v46 = vld [vmem:[%s4734_s0 + $0x18] sm:$0xff]  ;;  %v3265_v48 = vpack.c.bf16 %v2281_v45, %v2280_v44  ;;  %v372_v49 = vld [vmem:[%s4735_s3 + $0x50] sm:$0xff] }
  0x12   :  { %322 = vst [vmem:[#allocation2 + $0x108] sm:$0xff] %v3493_v3  ;;  %323 = vst [vmem:[#allocation2 + $0x110] sm:$0xff] %v3493_v3  ;;  %2240 = vmatmul.mubr.msk.f32.gmra.mrb[2].mxu0 %vm49_vm1, %v24_v32  ;;  %v373_v50 = vld [vmem:[%s4735_s3 + $0x58] sm:$0xff]  ;;  %v2282_v51 = vld [vmem:[%s4735_s3 + $0x150] sm:$0xff] }
  0x13   :  { %324 = vst [vmem:[#allocation2 + $0x118] sm:$0xff] %v3493_v3  ;;  %325 = vst [vmem:[#allocation2 + $0x120] sm:$0xff] %v3493_v3  ;;  %181 = vmatprep.mubr.f32.mxu0 %v3493_v3  ;;  %3256 = vmatpush3.bf16.msra.mxu0 %v3253_v27  ;;  %v2283_v52 = vld [vmem:[%s4735_s3 + $0x158] sm:$0xff]  ;;  %v27_v53 = vld [vmem:[%s4734_s0 + $0x20] sm:$0xff]  ;;  %v3205_v54 = vpack.c.bf16 %v373_v50, %v372_v49 }
  0x14   :  { %326 = vst [vmem:[#allocation2 + $0x128] sm:$0xff] %v3493_v3  ;;  %327 = vst [vmem:[#allocation2 + $0x130] sm:$0xff] %v3493_v3  ;;  %3258 = vmatprep.subr.bf16.mxu0 %v3257_v34  ;;  %3196 = vmatpush3.bf16.msra.mxu1 %v3193_v33  ;;  %v3269_v55 = vpack.c.bf16 %v2283_v52, %v2282_v51  ;;  %v28_v56 = vld [vmem:[%s4734_s0 + $0x28] sm:$0xff]  ;;  %v29_v57 = vld [vmem:[%s4734_s0 + $0x30] sm:$0xff] }
  0x15   :  { %328 = vst [vmem:[#allocation2 + $0x138] sm:$0xff] %v3493_v3  ;;  %3198 = vmatprep.subr.bf16.mxu1 %v3197_v40  ;;  %v30_v58 = vld [vmem:[%s4734_s0 + $0x38] sm:$0xff]  ;;  %v31_v59 = vld [vmem:[%s4734_s0 + $0x40] sm:$0xff]  ;;  %v32_v60 = vld [vmem:[%s4734_s0 + $0x48] sm:$0xff] }
  0x16   :  { %2241 = vmatmul.mubr.msk.f32.gmra.mrb[4].mxu0 %vm49_vm1, %v25_v39  ;;  %v33_v61 = vld [vmem:[%s4734_s0 + $0x50] sm:$0xff]  ;;  %v34_v62 = vld [vmem:[%s4734_s0 + $0x58] sm:$0xff]  ;;  %v35_v63 = vld [vmem:[%s4734_s0 + $0x60] sm:$0xff] }
  0x17   :  { %187 = vmatprep.mubr.f32.mxu0 %v3493_v3  ;;  %3260 = vmatpush3.bf16.msra.mxu0 %v3257_v34  ;;  %v36_v0 = vld [vmem:[%s4734_s0 + $0x68] sm:$0xff]  ;;  %v37_v1 = vld [vmem:[%s4734_s0 + $0x70] sm:$0xff]  ;;  %v38_v2 = vld [vmem:[%s4734_s0 + $0x78] sm:$0xff] }
  0x18   :  { %3262 = vmatprep.subr.bf16.mxu0 %v3261_v41  ;;  %3200 = vmatpush3.bf16.msra.mxu1 %v3197_v40  ;;  %v374_v4 = vld [vmem:[%s4735_s3 + $0x60] sm:$0xff]  ;;  %v375_v5 = vld [vmem:[%s4735_s3 + $0x68] sm:$0xff]  ;;  %v376_v10 = vld [vmem:[%s4735_s3 + $0x70] sm:$0xff] }
  0x19   :  { %3202 = vmatprep.subr.bf16.mxu1 %v3201_v47  ;;  %v2284_v6 = vld [vmem:[%s4735_s3 + $0x160] sm:$0xff]  ;;  %v3209_v7 = vpack.c.bf16 %v375_v5, %v374_v4  ;;  %v2285_v8 = vld [vmem:[%s4735_s3 + $0x168] sm:$0xff]  ;;  %v377_v11 = vld [vmem:[%s4735_s3 + $0x78] sm:$0xff] }
  0x1a   :  { %2242 = vmatmul.mubr.msk.f32.gmra.mrb[6].mxu0 %vm49_vm1, %v26_v46  ;;  %v3273_v9 = vpack.c.bf16 %v2285_v8, %v2284_v6  ;;  %v2286_v12 = vld [vmem:[%s4735_s3 + $0x170] sm:$0xff]  ;;  %v3213_v13 = vpack.c.bf16 %v377_v11, %v376_v10  ;;  %v2287_v14 = vld [vmem:[%s4735_s3 + $0x178] sm:$0xff]  ;;  %v733_v16 = vld [vmem:[#allocation2 + $0x2] sm:$0xff] }
  0x1b   :  { %193 = vmatprep.mubr.f32.mxu0 %v3493_v3  ;;  %3264 = vmatpush3.bf16.msra.mxu0 %v3261_v41  ;;  %v3277_v15 = vpack.c.bf16 %v2287_v14, %v2286_v12  ;;  %v2256_v17 = vld [vmem:[%s4735_s3 + $0x80] sm:$0xff]  ;;  %v2257_v18 = vld [vmem:[%s4735_s3 + $0x88] sm:$0xff]  ;;  %v2258_v25 = vld [vmem:[%s4735_s3 + $0x90] sm:$0xff] }
  0x1c   :  { %3266 = vmatprep.subr.bf16.mxu0 %v3265_v48  ;;  %3204 = vmatpush3.bf16.msra.mxu1 %v3201_v47  ;;  %v2304_v19 = vld [vmem:[%s4735_s3 + $0x200] sm:$0xff]  ;;  %v3217_v20 = vpack.c.bf16 %v2257_v18, %v2256_v17  ;;  %v2305_v21 = vld [vmem:[%s4735_s3 + $0x208] sm:$0xff]  ;;  %v2259_v27 = vld [vmem:[%s4735_s3 + $0x98] sm:$0xff] }
  0x1d   :  { %3206 = vmatprep.subr.bf16.mxu1 %v3205_v54  ;;  %v3313_v22 = vpack.c.bf16 %v2305_v21, %v2304_v19  ;;  %v2306_v28 = vld [vmem:[%s4735_s3 + $0x210] sm:$0xff]  ;;  %v2307_v29 = vld [vmem:[%s4735_s3 + $0x218] sm:$0xff]  ;;  %v3221_v31 = vpack.c.bf16 %v2259_v27, %v2258_v25  ;;  %v2260_v33 = vld [vmem:[%s4735_s3 + $0xa0] sm:$0xff] }
  0x1e   :  { %2243 = vmatmul.mubr.msk.f32.gmra.mrb[8].mxu0 %vm49_vm1, %v27_v53  ;;  %v3317_v32 = vpack.c.bf16 %v2307_v29, %v2306_v28  ;;  %v2261_v34 = vld [vmem:[%s4735_s3 + $0xa8] sm:$0xff]  ;;  %v2308_v35 = vld [vmem:[%s4735_s3 + $0x220] sm:$0xff]  ;;  %v2262_v43 = vld [vmem:[%s4735_s3 + $0xb0] sm:$0xff] }
  0x1f   :  { %199 = vmatprep.mubr.f32.mxu0 %v3493_v3  ;;  %3268 = vmatpush3.bf16.msra.mxu0 %v3265_v48  ;;  %v2309_v39 = vld [vmem:[%s4735_s3 + $0x228] sm:$0xff]  ;;  %v3225_v41 = vpack.c.bf16 %v2261_v34, %v2260_v33  ;;  %v2263_v44 = vld [vmem:[%s4735_s3 + $0xb8] sm:$0xff]  ;;  %v2310_v45 = vld [vmem:[%s4735_s3 + $0x230] sm:$0xff] }
  0x20   :  { %3270 = vmatprep.subr.bf16.mxu0 %v3269_v55  ;;  %3208 = vmatpush3.bf16.msra.mxu1 %v3205_v54  ;;  %v3321_v42 = vpack.c.bf16 %v2309_v39, %v2308_v35  ;;  %v2311_v49 = vld [vmem:[%s4735_s3 + $0x238] sm:$0xff]  ;;  %v3229_v51 = vpack.c.bf16 %v2263_v44, %v2262_v43  ;;  %v2264_v53 = vld [vmem:[%s4735_s3 + $0xc0] sm:$0xff]  ;;  %v2265_v54 = vld [vmem:[%s4735_s3 + $0xc8] sm:$0xff] }
  0x21   :  { %3210 = vmatprep.subr.bf16.mxu1 %v3209_v7  ;;  %v3325_v52 = vpack.c.bf16 %v2311_v49, %v2310_v45  ;;  %v2315_v6 = vld [vmem:[%s4735_s3 + $0x258] sm:$0xff]  ;;  %v2268_v10 = vld [vmem:[%s4735_s3 + $0xe0] sm:$0xff]  ;;  %v2269_v11 = vld [vmem:[%s4735_s3 + $0xe8] sm:$0xff] }
  0x22   :  { %2244 = vmatmul.mubr.msk.f32.gmra.mrb[10].mxu0 %vm49_vm1, %v28_v56  ;;  %v2316_v12 = vld [vmem:[%s4735_s3 + $0x260] sm:$0xff]  ;;  %v3241_v18 = vpack.c.bf16 %v2269_v11, %v2268_v10  ;;  %v2270_v25 = vld [vmem:[%s4735_s3 + $0xf0] sm:$0xff]  ;;  %v2271_v28 = vld [vmem:[%s4735_s3 + $0xf8] sm:$0xff] }
  0x23   :  { %205 = vmatprep.mubr.f32.mxu0 %v3493_v3  ;;  %3272 = vmatpush3.bf16.msra.mxu0 %v3269_v55  ;;  %v2312_v55 = vld [vmem:[%s4735_s3 + $0x240] sm:$0xff]  ;;  %v2318_v29 = vld [vmem:[%s4735_s3 + $0x270] sm:$0xff]  ;;  %v3245_v39 = vpack.c.bf16 %v2271_v28, %v2270_v25  ;;  %v2289_v44 = vld [vmem:[%s4735_s3 + $0x188] sm:$0xff] }
  0x24   :  { %3274 = vmatprep.subr.bf16.mxu0 %v3273_v9  ;;  %3212 = vmatpush3.bf16.msra.mxu1 %v3209_v7  ;;  %v2336_v45 = vld [vmem:[%s4735_s3 + $0x300] sm:$0xff]  ;;  %v2337_v49 = vld [vmem:[%s4735_s3 + $0x308] sm:$0xff] }
  0x25   :  { %3214 = vmatprep.subr.bf16.mxu1 %v3213_v13 }
  0x26   :  { %2245 = vmatmul.mubr.msk.f32.gmra.mrb[12].mxu0 %vm49_vm1, %v29_v57 }
  0x27   :  { %211 = vmatprep.mubr.f32.mxu0 %v3493_v3  ;;  %3276 = vmatpush3.bf16.msra.mxu0 %v3273_v9 }
  0x28   :  { %3278 = vmatprep.subr.bf16.mxu0 %v3277_v15  ;;  %3216 = vmatpush3.bf16.msra.mxu1 %v3213_v13 }
  0x29   :  { %3218 = vmatprep.subr.bf16.mxu1 %v3217_v20 }
  0x2a   :  { %2246 = vmatmul.mubr.msk.f32.gmra.mrb[14].mxu0 %vm49_vm1, %v30_v58 }
  0x2b   :  { %217 = vmatprep.mubr.f32.mxu0 %v3493_v3  ;;  %3280 = vmatpush3.bf16.msra.mxu0 %v3277_v15 }
  0x2c   :  { %3314 = vmatprep.subr.bf16.mxu0 %v3313_v22 }
  0x2e   :  { %2247 = vmatmul.mubr.msk.f32.gmra.mrb[16].mxu0 %vm49_vm1, %v31_v59  ;;  %v2313_v59 = vld [vmem:[%s4735_s3 + $0x248] sm:$0xff] }
  0x2f   :  { %223 = vmatprep.mubr.f32.mxu0 %v3493_v3 }
  0x32   :  { %2248 = vmatmul.mubr.msk.f32.gmra.mrb[18].mxu0 %vm49_vm1, %v32_v60 }
  0x33   :  { %229 = vmatprep.mubr.f32.mxu0 %v3493_v3 }
  0x36   :  { %2249 = vmatmul.mubr.msk.f32.gmra.mrb[20].mxu0 %vm49_vm1, %v33_v61  ;;  %v3233_v61 = vpack.c.bf16 %v2265_v54, %v2264_v53  ;;  %v3978_v53 = vpack.c.bf16 %v2337_v49, %v2336_v45  ;;  %v2290_v49 = vld [vmem:[%s4735_s3 + $0x190] sm:$0xff] }
  0x37   :  { %235 = vmatprep.mubr.f32.mxu0 %v3493_v3 }
  0x3a   :  { %2250 = vmatmul.mubr.msk.f32.gmra.mrb[22].mxu0 %vm49_vm1, %v34_v62  ;;  %v3329_v62 = vpack.c.bf16 %v2313_v59, %v2312_v55 }
  0x3b   :  { %241 = vmatprep.mubr.f32.mxu0 %v3493_v3 }
  0x3e   :  { %2251 = vmatmul.mubr.msk.f32.gmra.mrb[24].mxu0 %vm49_vm1, %v35_v63  ;;  %v2266_v63 = vld [vmem:[%s4735_s3 + $0xd0] sm:$0xff] }
  0x3f   :  { %247 = vmatprep.mubr.f32.mxu0 %v3493_v3 }
  0x42   :  { %2252 = vmatmul.mubr.msk.f32.gmra.mrb[26].mxu0 %vm49_vm1, %v36_v0  ;;  %v2267_v0 = vld [vmem:[%s4735_s3 + $0xd8] sm:$0xff] }
  0x43   :  { %253 = vmatprep.mubr.f32.mxu0 %v3493_v3  ;;  %v3237_v8 = vpack.c.bf16 %v2267_v0, %v2266_v63 }
  0x46   :  { %2253 = vmatmul.mubr.msk.f32.gmra.mrb[28].mxu0 %vm49_vm1, %v37_v1  ;;  %v2314_v1 = vld [vmem:[%s4735_s3 + $0x250] sm:$0xff] }
  0x47   :  { %259 = vmatprep.mubr.f32.mxu0 %v3493_v3  ;;  %v3333_v9 = vpack.c.bf16 %v2315_v6, %v2314_v1 }
  0x4a   :  { %2254 = vmatmul.mubr.msk.f32.gmra.mrb[30].mxu0 %vm49_vm1, %v38_v2 }
  0x4b   :  { %2817 = vmatprep.mubr.f32.mxu0 %v733_v16  ;;  %v2317_v16 = vld [vmem:[%s4735_s3 + $0x268] sm:$0xff] }
  0x4c   :  { %v3337_v19 = vpack.c.bf16 %v2317_v16, %v2316_v12 }
  0xe1   :  { %v3790_v23 = vpop.f32.mrb[0].mxu0 }
  0xe2   :  { %330 = vst [vmem:[#allocation2 + $0x11] sm:$0xff] %v3790_v23  ;;  %v3793_v24 = vpop.f32.mrb[1].mxu0 }
  0xe5   :  { %v3798_v26 = vpop.f32.mrb[2].mxu0 }
  0xe6   :  { %331 = vst [vmem:[#allocation2 + $0x21] sm:$0xff] %v3798_v26  ;;  %v3810_v30 = vpop.f32.mrb[3].mxu0 }
  0xe9   :  { %v3821_v36 = vpop.f32.mrb[4].mxu0  ;;  %v3823_v37 = vld [vmem:[#allocation2 + $0x10] sm:$0xff] }
  0xea   :  { %v3825_v38 = vld [vmem:[#allocation2 + $0x12] sm:$0xff]  ;;  %332 = vst [vmem:[#allocation2 + $0x31] sm:$0xff] %v3821_v36  ;;  %v3831_v40 = vpop.f32.mrb[5].mxu0  ;;  %2706 = vmatmul.mubr.f32.vlgmr.msra.gmra.mrb[0].mxu1 %v3823_v37 }
  0xeb   :  { %2818 = vmatmul.mubr.f32.vlgmr.msra.gmra.mrb[32].mxu0 %v3825_v38  ;;  %3220 = vmatpush3.bf16.msra.mxu1 %v3217_v20 }
  0xec   :  { %3316 = vmatpush3.bf16.msra.mxu0 %v3313_v22  ;;  %3222 = vmatprep.subr.bf16.mxu1 %v3221_v31 }
  0xed   :  { %3318 = vmatprep.subr.bf16.mxu0 %v3317_v32  ;;  %v3844_v46 = vpop.f32.mrb[6].mxu0  ;;  %v3846_v47 = vld [vmem:[#allocation2 + $0x20] sm:$0xff] }
  0xee   :  { %v3848_v48 = vld [vmem:[#allocation2 + $0x22] sm:$0xff]  ;;  %333 = vst [vmem:[#allocation2 + $0x41] sm:$0xff] %v3844_v46  ;;  %v3854_v50 = vpop.f32.mrb[7].mxu0  ;;  %2708 = vmatprep.mubr.f32.mxu1 %v3846_v47 }
  0xef   :  { %2820 = vmatprep.mubr.f32.mxu0 %v3848_v48  ;;  %3224 = vmatpush3.bf16.msra.mxu1 %v3221_v31  ;;  %v2319_v31 = vld [vmem:[%s4735_s3 + $0x278] sm:$0xff] }
  0xf0   :  { %3320 = vmatpush3.bf16.msra.mxu0 %v3317_v32  ;;  %3226 = vmatprep.subr.bf16.mxu1 %v3225_v41  ;;  %v741_v32 = vld [vmem:[#allocation2 + $0xa2] sm:$0xff] }
  0xf1   :  { %3322 = vmatprep.subr.bf16.mxu0 %v3321_v42  ;;  %v3867_v56 = vpop.f32.mrb[8].mxu0  ;;  %v3869_v57 = vld [vmem:[#allocation2 + $0x30] sm:$0xff] }
  0xf2   :  { %v3871_v58 = vld [vmem:[#allocation2 + $0x32] sm:$0xff]  ;;  %334 = vst [vmem:[#allocation2 + $0x51] sm:$0xff] %v3867_v56  ;;  %v3877_v60 = vpop.f32.mrb[9].mxu0  ;;  %2709 = vmatmul.mubr.f32.gmra.mrb[2].mxu1 %v3869_v57 }
  0xf3   :  { %2821 = vmatmul.mubr.f32.gmra.mrb[34].mxu0 %v3871_v58  ;;  %3228 = vmatpush3.bf16.msra.mxu1 %v3225_v41  ;;  %v3341_v41 = vpack.c.bf16 %v2319_v31, %v2318_v29 }
  0xf4   :  { %3324 = vmatpush3.bf16.msra.mxu0 %v3321_v42  ;;  %3230 = vmatprep.subr.bf16.mxu1 %v3229_v51  ;;  %v2288_v42 = vld [vmem:[%s4735_s3 + $0x180] sm:$0xff] }
  0xf5   :  { %3326 = vmatprep.subr.bf16.mxu0 %v3325_v52  ;;  %v3890_v2 = vpop.f32.mrb[10].mxu0  ;;  %v3892_v4 = vld [vmem:[#allocation2 + $0x40] sm:$0xff] }
  0xf6   :  { %v3894_v5 = vld [vmem:[#allocation2 + $0x42] sm:$0xff]  ;;  %335 = vst [vmem:[#allocation2 + $0x61] sm:$0xff] %v3890_v2  ;;  %v3900_v7 = vpop.f32.mrb[11].mxu0  ;;  %2711 = vmatprep.mubr.f32.mxu1 %v3892_v4 }
  0xf7   :  { %2823 = vmatprep.mubr.f32.mxu0 %v3894_v5  ;;  %3232 = vmatpush3.bf16.msra.mxu1 %v3229_v51 }
  0xf8   :  { %3328 = vmatpush3.bf16.msra.mxu0 %v3325_v52  ;;  %3234 = vmatprep.subr.bf16.mxu1 %v3233_v61  ;;  %v3976_v52 = vpack.c.bf16 %v2289_v44, %v2288_v42  ;;  %v539_v42 = vld [vmem:[#allocation2 + $0x1] sm:$0xff] }
  0xf9   :  { %3330 = vmatprep.subr.bf16.mxu0 %v3329_v62  ;;  %v3913_v13 = vpop.f32.mrb[12].mxu0  ;;  %v3915_v14 = vld [vmem:[#allocation2 + $0x50] sm:$0xff] }
  0xfa   :  { %v3917_v15 = vld [vmem:[#allocation2 + $0x52] sm:$0xff]  ;;  %336 = vst [vmem:[#allocation2 + $0x71] sm:$0xff] %v3913_v13  ;;  %v3923_v17 = vpop.f32.mrb[13].mxu0  ;;  %2712 = vmatmul.mubr.f32.gmra.mrb[4].mxu1 %v3915_v14 }
  0xfb   :  { %2824 = vmatmul.mubr.f32.gmra.mrb[36].mxu0 %v3917_v15  ;;  %3236 = vmatpush3.bf16.msra.mxu1 %v3233_v61 }
  0xfc   :  { %3332 = vmatpush3.bf16.msra.mxu0 %v3329_v62  ;;  %3238 = vmatprep.subr.bf16.mxu1 %v3237_v8 }
  0xfd   :  { %3334 = vmatprep.subr.bf16.mxu0 %v3333_v9  ;;  %v3927_v20 = vpop.f32.mrb[14].mxu0  ;;  %v3929_v21 = vld [vmem:[#allocation2 + $0x60] sm:$0xff] }
  0xfe   :  { %v3931_v22 = vld [vmem:[#allocation2 + $0x62] sm:$0xff]  ;;  %337 = vst [vmem:[#allocation2 + $0x81] sm:$0xff] %v3927_v20  ;;  %v3937_v27 = vpop.f32.mrb[15].mxu0  ;;  %2714 = vmatprep.mubr.f32.mxu1 %v3929_v21 }
  0xff   :  { %2826 = vmatprep.mubr.f32.mxu0 %v3931_v22  ;;  %3240 = vmatpush3.bf16.msra.mxu1 %v3237_v8 }
 0x100   :  { %3336 = vmatpush3.bf16.msra.mxu0 %v3333_v9  ;;  %3242 = vmatprep.subr.bf16.mxu1 %v3241_v18 }
 0x101   :  { %3338 = vmatprep.subr.bf16.mxu0 %v3337_v19  ;;  %v3950_v33 = vpop.f32.mrb[16].mxu0  ;;  %v3952_v34 = vld [vmem:[#allocation2 + $0x70] sm:$0xff] }
 0x102   :  { %v3954_v35 = vld [vmem:[#allocation2 + $0x72] sm:$0xff]  ;;  %338 = vst [vmem:[#allocation2 + $0xb1] sm:$0xff] %v3950_v33  ;;  %v3960_v43 = vpop.f32.mrb[17].mxu0  ;;  %2715 = vmatmul.mubr.f32.gmra.mrb[6].mxu1 %v3952_v34 }
 0x103   :  { %4740 = vst [vmem:[#allocation3_spill] sm:$0xff] %v3960_v43  ;;  %2827 = vmatmul.mubr.f32.gmra.mrb[38].mxu0 %v3954_v35  ;;  %2717 = vmatprep.mubr.f32.mxu1 %v3493_v3  ;;  %v2293_v43 = vld [vmem:[%s4735_s3 + $0x1a8] sm:$0xff] }
 0x104   :  { %2829 = vmatprep.mubr.f32.mxu0 %v741_v32  ;;  %3244 = vmatpush3.bf16.msra.mxu1 %v3241_v18 }
 0x105   :  { %3340 = vmatpush3.bf16.msra.mxu0 %v3337_v19  ;;  %v3974_v51 = vpop.f32.mrb[18].mxu0  ;;  %3246 = vmatprep.subr.bf16.mxu1 %v3245_v39 }
 0x106   :  { %3342 = vmatprep.subr.bf16.mxu0 %v3341_v41  ;;  %339 = vst [vmem:[#allocation2 + $0xc1] sm:$0xff] %v3974_v51  ;;  %v3981_v54 = vpop.f32.mrb[19].mxu0 }
 0x107   :  { %4741 = vst [vmem:[#allocation4_spill] sm:$0xff] %v3981_v54  ;;  %v2340_v54 = vld [vmem:[%s4735_s3 + $0x320] sm:$0xff] }
 0x108   :  { %3248 = vmatpush3.bf16.msra.mxu1 %v3245_v39 }
 0x109   :  { %3344 = vmatpush3.bf16.msra.mxu0 %v3341_v41  ;;  %v3983_v55 = vpop.f32.mrb[20].mxu0  ;;  %v3985_v3 = vld [vmem:[#allocation2 + $0xb0] sm:$0xff]  ;;  %3282 = vmatprep.subr.bf16.mxu1 %v3976_v52 }
 0x10a   :  { %v3987_v59 = vld [vmem:[#allocation2 + $0xb2] sm:$0xff]  ;;  %3378 = vmatprep.subr.bf16.mxu0 %v3978_v53  ;;  %340 = vst [vmem:[#allocation2 + $0xd1] sm:$0xff] %v3983_v55  ;;  %v3992_v61 = vpop.f32.mrb[21].mxu0  ;;  %2718 = vmatmul.mubr.f32.gmra.mrb[8].mxu1 %v3985_v3 }
 0x10b   :  { %4742 = vst [vmem:[#allocation5_spill] sm:$0xff] %v3992_v61  ;;  %2830 = vmatmul.mubr.f32.gmra.mrb[40].mxu0 %v3987_v59 }
 0x10d   :  { %v3996_v62 = vpop.f32.mrb[22].mxu0  ;;  %v3998_v63 = vld [vmem:[#allocation2 + $0xc0] sm:$0xff] }
 0x10e   :  { %v4000_v0 = vld [vmem:[#allocation2 + $0xc2] sm:$0xff]  ;;  %341 = vst [vmem:[#allocation2 + $0xe1] sm:$0xff] %v3996_v62  ;;  %v4003_v1 = vpop.f32.mrb[23].mxu0  ;;  %2720 = vmatprep.mubr.f32.mxu1 %v3998_v63 }
 0x10f   :  { %4743 = vst [vmem:[#allocation6_spill] sm:$0xff] %v4003_v1  ;;  %2832 = vmatprep.mubr.f32.mxu0 %v4000_v0  ;;  %v2292_v1 = vld [vmem:[%s4735_s3 + $0x1a0] sm:$0xff] }
 0x111   :  { %v4007_v6 = vpop.f32.mrb[24].mxu0  ;;  %v4009_v8 = vld [vmem:[#allocation2 + $0xd0] sm:$0xff] }
 0x112   :  { %v4011_v9 = vld [vmem:[#allocation2 + $0xd2] sm:$0xff]  ;;  %342 = vst [vmem:[#allocation2 + $0xf1] sm:$0xff] %v4007_v6  ;;  %v4014_v10 = vpop.f32.mrb[25].mxu0  ;;  %2721 = vmatmul.mubr.f32.gmra.mrb[10].mxu1 %v4009_v8 }
 0x113   :  { %4744 = vst [vmem:[#allocation7_spill] sm:$0xff] %v4014_v10  ;;  %2833 = vmatmul.mubr.f32.gmra.mrb[42].mxu0 %v4011_v9  ;;  %v2339_v10 = vld [vmem:[%s4735_s3 + $0x318] sm:$0xff] }
 0x115   :  { %v4018_v11 = vpop.f32.mrb[26].mxu0  ;;  %v4020_v12 = vld [vmem:[#allocation2 + $0xe0] sm:$0xff] }
 0x116   :  { %v4022_v16 = vld [vmem:[#allocation2 + $0xe2] sm:$0xff]  ;;  %343 = vst [vmem:[#allocation2 + $0x101] sm:$0xff] %v4018_v11  ;;  %v4025_v18 = vpop.f32.mrb[27].mxu0  ;;  %2723 = vmatprep.mubr.f32.mxu1 %v4020_v12 }
 0x117   :  { %4745 = vst [vmem:[#allocation8_spill] sm:$0xff] %v4025_v18  ;;  %2835 = vmatprep.mubr.f32.mxu0 %v4022_v16 }
 0x119   :  { %v4029_v19 = vpop.f32.mrb[28].mxu0  ;;  %v4031_v25 = vld [vmem:[#allocation2 + $0xf0] sm:$0xff] }
 0x11a   :  { %v4033_v28 = vld [vmem:[#allocation2 + $0xf2] sm:$0xff]  ;;  %344 = vst [vmem:[#allocation2 + $0x111] sm:$0xff] %v4029_v19  ;;  %v4036_v29 = vpop.f32.mrb[29].mxu0  ;;  %2724 = vmatmul.mubr.f32.gmra.mrb[12].mxu1 %v4031_v25 }
 0x11b   :  { %4746 = vst [vmem:[#allocation9_spill] sm:$0xff] %v4036_v29  ;;  %2836 = vmatmul.mubr.f32.gmra.mrb[44].mxu0 %v4033_v28  ;;  %v2291_v29 = vld [vmem:[%s4735_s3 + $0x198] sm:$0xff] }
 0x11c   :  { %v3285_v18 = vpack.c.bf16 %v2291_v29, %v2290_v49  ;;  %v2298_v49 = vld [vmem:[%s4735_s3 + $0x1d0] sm:$0xff] }
 0x11d   :  { %v4040_v31 = vld [vmem:[#allocation2 + $0x100] sm:$0xff]  ;;  %v4044_v39 = vpop.f32.mrb[30].mxu0 }
 0x11e   :  { %v4042_v32 = vld [vmem:[#allocation2 + $0x102] sm:$0xff]  ;;  %2726 = vmatprep.mubr.f32.mxu1 %v4040_v31  ;;  %345 = vst [vmem:[#allocation2 + $0x121] sm:$0xff] %v4044_v39  ;;  %v4049_v41 = vpop.f32.mrb[31].mxu0 }
 0x11f   :  { %2838 = vmatprep.mubr.f32.mxu0 %v4042_v32  ;;  %4747 = vst [vmem:[#allocation10_spill] sm:$0xff] %v4049_v41  ;;  %v2338_v41 = vld [vmem:[%s4735_s3 + $0x310] sm:$0xff] }
 0x120   :  { %v3381_v61 = vpack.c.bf16 %v2339_v10, %v2338_v41  ;;  %v2341_v10 = vld [vmem:[%s4735_s3 + $0x328] sm:$0xff]  ;;  %v2294_v41 = vld [vmem:[%s4735_s3 + $0x1b0] sm:$0xff] }
 0x121   :  { %v4051_v44 = vld [vmem:[#allocation2 + $0x110] sm:$0xff]  ;;  %v3385_v29 = vpack.c.bf16 %v2341_v10, %v2340_v54  ;;  %v2296_v54 = vld [vmem:[%s4735_s3 + $0x1c0] sm:$0xff] }
 0x122   :  { %v4053_v45 = vld [vmem:[#allocation2 + $0x112] sm:$0xff]  ;;  %2727 = vmatmul.mubr.f32.gmra.mrb[14].mxu1 %v4051_v44 }
 0x123   :  { %2839 = vmatmul.mubr.f32.gmra.mrb[46].mxu0 %v4053_v45  ;;  %2761 = vmatprep.mubr.f32.mxu1 %v539_v42  ;;  %v2346_v10 = vld [vmem:[%s4735_s3 + $0x350] sm:$0xff] }
 0x124   :  { %2929 = vmatprep.mubr.f32.mxu0 %v3790_v23 }
 0x126   :  { %2762 = vmatmul.mubr.f32.vlgmr.msra.gmra.mrb[16].mxu1 %v3790_v23  ;;  %v3289_v23 = vpack.c.bf16 %v2293_v43, %v2292_v1  ;;  %v2343_v43 = vld [vmem:[%s4735_s3 + $0x338] sm:$0xff]  ;;  %v2297_v1 = vld [vmem:[%s4735_s3 + $0x1c8] sm:$0xff] }
 0x127   :  { %2930 = vmatmul.mubr.f32.vlgmr.msra.gmra.mrb[48].mxu0 %v3798_v26  ;;  %3284 = vmatpush3.bf16.msra.mxu1 %v3976_v52  ;;  %v2342_v52 = vld [vmem:[%s4735_s3 + $0x330] sm:$0xff] }
 0x128   :  { %2764 = vmatprep.mubr.f32.mxu1 %v3798_v26  ;;  %2932 = vmatprep.mubr.f32.mxu0 %v3821_v36  ;;  %v2295_v26 = vld [vmem:[%s4735_s3 + $0x1b8] sm:$0xff] }
 0x129   :  { %3380 = vmatpush3.bf16.msra.mxu0 %v3978_v53  ;;  %3286 = vmatprep.subr.bf16.mxu1 %v3285_v18  ;;  %v3389_v53 = vpack.c.bf16 %v2343_v43, %v2342_v52  ;;  %v2349_v52 = vld [vmem:[%s4735_s3 + $0x368] sm:$0xff] }
 0x12a   :  { %3382 = vmatprep.subr.bf16.mxu0 %v3381_v61  ;;  %2765 = vmatmul.mubr.f32.gmra.mrb[18].mxu1 %v3821_v36  ;;  %v3293_v36 = vpack.c.bf16 %v2295_v26, %v2294_v41  ;;  %v2301_v41 = vld [vmem:[%s4735_s3 + $0x1e8] sm:$0xff]  ;;  %v2348_v26 = vld [vmem:[%s4735_s3 + $0x360] sm:$0xff] }
 0x12b   :  { %2933 = vmatmul.mubr.f32.gmra.mrb[50].mxu0 %v3844_v46  ;;  %3288 = vmatpush3.bf16.msra.mxu1 %v3285_v18  ;;  %v3297_v18 = vpack.c.bf16 %v2297_v1, %v2296_v54  ;;  %v3401_v43 = vpack.c.bf16 %v2349_v52, %v2348_v26  ;;  %v2351_v54 = vld [vmem:[%s4735_s3 + $0x378] sm:$0xff] }
 0x12c   :  { %2767 = vmatprep.mubr.f32.mxu1 %v3844_v46  ;;  %2935 = vmatprep.mubr.f32.mxu0 %v3867_v56  ;;  %v2344_v46 = vld [vmem:[%s4735_s3 + $0x340] sm:$0xff] }
 0x12d   :  { %3384 = vmatpush3.bf16.msra.mxu0 %v3381_v61  ;;  %3290 = vmatprep.subr.bf16.mxu1 %v3289_v23  ;;  %v2345_v61 = vld [vmem:[%s4735_s3 + $0x348] sm:$0xff] }
 0x12e   :  { %3386 = vmatprep.subr.bf16.mxu0 %v3385_v29  ;;  %2768 = vmatmul.mubr.f32.gmra.mrb[20].mxu1 %v3867_v56  ;;  %v547_v56 = vld [vmem:[#allocation2 + $0xa1] sm:$0xff]  ;;  %v3393_v42 = vpack.c.bf16 %v2345_v61, %v2344_v46 }
 0x12f   :  { %2936 = vmatmul.mubr.f32.gmra.mrb[52].mxu0 %v3890_v2  ;;  %3292 = vmatpush3.bf16.msra.mxu1 %v3289_v23  ;;  %v2347_v23 = vld [vmem:[%s4735_s3 + $0x358] sm:$0xff]  ;;  %v2320_v46 = vld [vmem:[%s4735_s3 + $0x280] sm:$0xff]  ;;  %v2321_v61 = vld [vmem:[%s4735_s3 + $0x288] sm:$0xff] }
 0x130   :  { %2770 = vmatprep.mubr.f32.mxu1 %v3890_v2  ;;  %2938 = vmatprep.mubr.f32.mxu0 %v3913_v13  ;;  %v2299_v2 = vld [vmem:[%s4735_s3 + $0x1d8] sm:$0xff] }
 0x131   :  { %3388 = vmatpush3.bf16.msra.mxu0 %v3385_v29  ;;  %3294 = vmatprep.subr.bf16.mxu1 %v3293_v36  ;;  %v2300_v29 = vld [vmem:[%s4735_s3 + $0x1e0] sm:$0xff] }
 0x132   :  { %3390 = vmatprep.subr.bf16.mxu0 %v3389_v53  ;;  %2771 = vmatmul.mubr.f32.gmra.mrb[22].mxu1 %v3913_v13  ;;  %v3301_v13 = vpack.c.bf16 %v2299_v2, %v2298_v49  ;;  %v2322_v49 = vld [vmem:[%s4735_s3 + $0x290] sm:$0xff]  ;;  %v2323_v2 = vld [vmem:[%s4735_s3 + $0x298] sm:$0xff] }
 0x133   :  { %2939 = vmatmul.mubr.f32.gmra.mrb[54].mxu0 %v3927_v20  ;;  %3296 = vmatpush3.bf16.msra.mxu1 %v3293_v36  ;;  %v3397_v20 = vpack.c.bf16 %v2347_v23, %v2346_v10  ;;  %v2302_v36 = vld [vmem:[%s4735_s3 + $0x1f0] sm:$0xff]  ;;  %v2371_v23 = vld [vmem:[%s4735_s3 + $0x418] sm:$0xff] }
 0x134   :  { %2941 = vmatprep.mubr.f32.mxu0 %v3950_v33  ;;  %2773 = vmatprep.mubr.f32.mxu1 %v547_v56  ;;  %v2369_v56 = vld [vmem:[%s4735_s3 + $0x408] sm:$0xff]  ;;  %v2370_v10 = vld [vmem:[%s4735_s3 + $0x410] sm:$0xff] }
 0x135   :  { %3392 = vmatpush3.bf16.msra.mxu0 %v3389_v53  ;;  %3298 = vmatprep.subr.bf16.mxu1 %v3297_v18  ;;  %v2303_v53 = vld [vmem:[%s4735_s3 + $0x1f8] sm:$0xff] }
 0x136   :  { %3394 = vmatprep.subr.bf16.mxu0 %v3393_v42  ;;  %2774 = vmatmul.mubr.f32.gmra.mrb[24].mxu1 %v3950_v33  ;;  %v3305_v33 = vpack.c.bf16 %v2301_v41, %v2300_v29  ;;  %v2325_v29 = vld [vmem:[%s4735_s3 + $0x2a8] sm:$0xff]  ;;  %v2372_v41 = vld [vmem:[%s4735_s3 + $0x420] sm:$0xff] }
 0x137   :  { %2942 = vmatmul.mubr.f32.gmra.mrb[56].mxu0 %v3974_v51  ;;  %3300 = vmatpush3.bf16.msra.mxu1 %v3297_v18  ;;  %v3345_v18 = vpack.c.bf16 %v2321_v61, %v2320_v46  ;;  %v2330_v61 = vld [vmem:[%s4735_s3 + $0x2d0] sm:$0xff] }
 0x138   :  { %2776 = vmatprep.mubr.f32.mxu1 %v3974_v51  ;;  %2944 = vmatprep.mubr.f32.mxu0 %v3983_v55  ;;  %v2350_v51 = vld [vmem:[%s4735_s3 + $0x370] sm:$0xff] }
 0x139   :  { %3396 = vmatpush3.bf16.msra.mxu0 %v3393_v42  ;;  %3302 = vmatprep.subr.bf16.mxu1 %v3301_v13  ;;  %v3405_v1 = vpack.c.bf16 %v2351_v54, %v2350_v51  ;;  %v2328_v51 = vld [vmem:[%s4735_s3 + $0x2c0] sm:$0xff] }
 0x13a   :  { %3398 = vmatprep.subr.bf16.mxu0 %v3397_v20  ;;  %2777 = vmatmul.mubr.f32.gmra.mrb[26].mxu1 %v3983_v55  ;;  %v3309_v55 = vpack.c.bf16 %v2303_v53, %v2302_v36  ;;  %v1516_v54 = vld [vmem:[#allocation2 + $0x80] sm:$0xff] }
 0x13b   :  { %2945 = vmatmul.mubr.f32.gmra.mrb[58].mxu0 %v3996_v62  ;;  %3304 = vmatpush3.bf16.msra.mxu1 %v3301_v13  ;;  %v3349_v13 = vpack.c.bf16 %v2323_v2, %v2322_v49 }
 0x13c   :  { %2779 = vmatprep.mubr.f32.mxu1 %v3996_v62  ;;  %2947 = vmatprep.mubr.f32.mxu0 %v4007_v6  ;;  %v2368_v62 = vld [vmem:[%s4735_s3 + $0x400] sm:$0xff] }
 0x13d   :  { %3400 = vmatpush3.bf16.msra.mxu0 %v3397_v20  ;;  %3306 = vmatprep.subr.bf16.mxu1 %v3305_v33  ;;  %v4183_v42 = vpack.c.bf16 %v2369_v56, %v2368_v62  ;;  %v4203_v20 = vpack.c.bf16 %v2371_v23, %v2370_v10  ;;  %v2331_v62 = vld [vmem:[%s4735_s3 + $0x2d8] sm:$0xff]  ;;  %v2378_v56 = vld [vmem:[%s4735_s3 + $0x450] sm:$0xff]  ;;  %v2332_v10 = vld [vmem:[%s4735_s3 + $0x2e0] sm:$0xff] }
 0x13e   :  { %3402 = vmatprep.subr.bf16.mxu0 %v3401_v43  ;;  %2780 = vmatmul.mubr.f32.gmra.mrb[28].mxu1 %v4007_v6  ;;  %v3365_v49 = vpack.c.bf16 %v2331_v62, %v2330_v61  ;;  %v2380_v23 = vld [vmem:[%s4735_s3 + $0x460] sm:$0xff]  ;;  %v2363_v61 = vld [vmem:[%s4735_s3 + $0x3d8] sm:$0xff]  ;;  %v2365_v62 = vld [vmem:[%s4735_s3 + $0x3e8] sm:$0xff] }
 0x13f   :  { %2948 = vmatmul.mubr.f32.gmra.mrb[60].mxu0 %v4018_v11  ;;  %3308 = vmatpush3.bf16.msra.mxu1 %v3305_v33  ;;  %v2326_v33 = vld [vmem:[%s4735_s3 + $0x2b0] sm:$0xff] }
 0x140   :  { %2782 = vmatprep.mubr.f32.mxu1 %v4018_v11  ;;  %2950 = vmatprep.mubr.f32.mxu0 %v4029_v19 }
 0x141   :  { %3404 = vmatpush3.bf16.msra.mxu0 %v3401_v43  ;;  %3310 = vmatprep.subr.bf16.mxu1 %v3309_v55  ;;  %v2374_v43 = vld [vmem:[%s4735_s3 + $0x430] sm:$0xff] }
 0x142   :  { %3406 = vmatprep.subr.bf16.mxu0 %v3405_v1  ;;  %2783 = vmatmul.mubr.f32.gmra.mrb[30].mxu1 %v4029_v19 }
 0x143   :  { %2951 = vmatmul.mubr.f32.gmra.mrb[62].mxu0 %v4044_v39  ;;  %3312 = vmatpush3.bf16.msra.mxu1 %v3309_v55  ;;  %v2377_v55 = vld [vmem:[%s4735_s3 + $0x448] sm:$0xff] }
 0x144   :  { %2873 = vmatprep.mubr.f32.mxu1 %v3823_v37  ;;  %3041 = vmatprep.mubr.f32.mxu0 %v3846_v47  ;;  %v2324_v37 = vld [vmem:[%s4735_s3 + $0x2a0] sm:$0xff] }
 0x145   :  { %3408 = vmatpush3.bf16.msra.mxu0 %v3405_v1  ;;  %3346 = vmatprep.subr.bf16.mxu1 %v3345_v18  ;;  %v3353_v26 = vpack.c.bf16 %v2325_v29, %v2324_v37  ;;  %v2334_v37 = vld [vmem:[%s4735_s3 + $0x2f0] sm:$0xff]  ;;  %v2335_v29 = vld [vmem:[%s4735_s3 + $0x2f8] sm:$0xff] }
 0x146   :  { %3442 = vmatprep.subr.bf16.mxu0 %v4183_v42  ;;  %2874 = vmatmul.mubr.f32.vlgmr.msra.gmra.mrb[32].mxu1 %v3846_v47  ;;  %v2373_v47 = vld [vmem:[%s4735_s3 + $0x428] sm:$0xff] }
 0x147   :  { %3348 = vmatpush3.bf16.msra.mxu1 %v3345_v18  ;;  %2876 = vmatprep.mubr.f32.mxu1 %v3869_v57  ;;  %v4223_v52 = vpack.c.bf16 %v2373_v47, %v2372_v41  ;;  %v2379_v18 = vld [vmem:[%s4735_s3 + $0x458] sm:$0xff] }
 0x148   :  { %3042 = vmatmul.mubr.f32.vlgmr.msra.gmra.mrb[64].mxu0 %v3869_v57  ;;  %3350 = vmatprep.subr.bf16.mxu1 %v3349_v13  ;;  %v2327_v57 = vld [vmem:[%s4735_s3 + $0x2b8] sm:$0xff]  ;;  %v4280_v2 = vpack.c.bf16 %v2379_v18, %v2378_v56  ;;  %v1706_v18 = vld [vmem:[#allocation2 + $0x41] sm:$0xff] }
 0x149   :  { %3044 = vmatprep.mubr.f32.mxu0 %v3892_v4  ;;  %3444 = vmatpush3.bf16.msra.mxu0 %v4183_v42  ;;  %v3357_v36 = vpack.c.bf16 %v2327_v57, %v2326_v33  ;;  %v2383_v47 = vld [vmem:[%s4735_s3 + $0x478] sm:$0xff]  ;;  %v2352_v57 = vld [vmem:[%s4735_s3 + $0x380] sm:$0xff] }
 0x14a   :  { %2877 = vmatmul.mubr.f32.gmra.mrb[34].mxu1 %v3892_v4  ;;  %3446 = vmatprep.subr.bf16.mxu0 %v4203_v20  ;;  %v2375_v4 = vld [vmem:[%s4735_s3 + $0x438] sm:$0xff] }
 0x14b   :  { %3352 = vmatpush3.bf16.msra.mxu1 %v3349_v13  ;;  %2879 = vmatprep.mubr.f32.mxu1 %v3915_v14  ;;  %v4243_v53 = vpack.c.bf16 %v2375_v4, %v2374_v43  ;;  %v2354_v43 = vld [vmem:[%s4735_s3 + $0x390] sm:$0xff]  ;;  %v2355_v4 = vld [vmem:[%s4735_s3 + $0x398] sm:$0xff] }
 0x14c   :  { %3045 = vmatmul.mubr.f32.gmra.mrb[66].mxu0 %v3915_v14  ;;  %3354 = vmatprep.subr.bf16.mxu1 %v3353_v26  ;;  %v2329_v14 = vld [vmem:[%s4735_s3 + $0x2c8] sm:$0xff]  ;;  %v2367_v56 = vld [vmem:[%s4735_s3 + $0x3f8] sm:$0xff] }
 0x14d   :  { %3047 = vmatprep.mubr.f32.mxu0 %v3929_v21  ;;  %3448 = vmatpush3.bf16.msra.mxu0 %v4203_v20  ;;  %v3361_v1 = vpack.c.bf16 %v2329_v14, %v2328_v51  ;;  %v2357_v51 = vld [vmem:[%s4735_s3 + $0x3a8] sm:$0xff]  ;;  %v2358_v14 = vld [vmem:[%s4735_s3 + $0x3b0] sm:$0xff] }
 0x14e   :  { %2880 = vmatmul.mubr.f32.gmra.mrb[36].mxu1 %v3929_v21  ;;  %3450 = vmatprep.subr.bf16.mxu0 %v4223_v52  ;;  %v2376_v21 = vld [vmem:[%s4735_s3 + $0x440] sm:$0xff] }
 0x14f   :  { %3356 = vmatpush3.bf16.msra.mxu1 %v3353_v26  ;;  %2882 = vmatprep.mubr.f32.mxu1 %v3952_v34  ;;  %v4261_v46 = vpack.c.bf16 %v2377_v55, %v2376_v21  ;;  %v1524_v26 = vld [vmem:[#allocation2 + $0x120] sm:$0xff]  ;;  %v2361_v21 = vld [vmem:[%s4735_s3 + $0x3c8] sm:$0xff]  ;;  %v1905_v55 = vld [vmem:[#allocation2 + $0x92] sm:$0xff] }
 0x150   :  { %3048 = vmatmul.mubr.f32.gmra.mrb[68].mxu0 %v3952_v34  ;;  %3358 = vmatprep.subr.bf16.mxu1 %v3357_v36  ;;  %v3492_v34 = vld [vmem:[#allocation2] sm:$0xff] }
 0x151   :  { %3050 = vmatprep.mubr.f32.mxu0 %v1516_v54  ;;  %3452 = vmatpush3.bf16.msra.mxu0 %v4223_v52 }
 0x152   :  { %2883 = vmatmul.mubr.f32.gmra.mrb[38].mxu1 %v1516_v54  ;;  %3454 = vmatprep.subr.bf16.mxu0 %v4243_v53  ;;  %v2359_v54 = vld [vmem:[%s4735_s3 + $0x3b8] sm:$0xff] }
 0x153   :  { %3360 = vmatpush3.bf16.msra.mxu1 %v3357_v36  ;;  %2885 = vmatprep.mubr.f32.mxu1 %v3985_v3  ;;  %v2333_v3 = vld [vmem:[%s4735_s3 + $0x2e8] sm:$0xff]  ;;  %v2356_v36 = vld [vmem:[%s4735_s3 + $0x3a0] sm:$0xff] }
 0x154   :  { %3051 = vmatmul.mubr.f32.gmra.mrb[70].mxu0 %v3492_v34  ;;  %3362 = vmatprep.subr.bf16.mxu1 %v3361_v1  ;;  %v3369_v13 = vpack.c.bf16 %v2333_v3, %v2332_v10  ;;  %v1710_v10 = vld [vmem:[#allocation2 + $0x81] sm:$0xff]  ;;  %v1711_v3 = vld [vmem:[#allocation2 + $0x91] sm:$0xff] }
 0x155   :  { %3053 = vmatprep.mubr.f32.mxu0 %v3998_v63  ;;  %3456 = vmatpush3.bf16.msra.mxu0 %v4243_v53 }
 0x156   :  { %2886 = vmatmul.mubr.f32.gmra.mrb[40].mxu1 %v3998_v63  ;;  %3458 = vmatprep.subr.bf16.mxu0 %v4261_v46  ;;  %v2381_v63 = vld [vmem:[%s4735_s3 + $0x468] sm:$0xff] }
 0x157   :  { %3364 = vmatpush3.bf16.msra.mxu1 %v3361_v1  ;;  %2888 = vmatprep.mubr.f32.mxu1 %v4009_v8  ;;  %v4306_v41 = vpack.c.bf16 %v2381_v63, %v2380_v23  ;;  %v2362_v1 = vld [vmem:[%s4735_s3 + $0x3d0] sm:$0xff]  ;;  %v1714_v23 = vld [vmem:[#allocation2 + $0xe1] sm:$0xff] }
 0x158   :  { %3054 = vmatmul.mubr.f32.gmra.mrb[72].mxu0 %v4009_v8  ;;  %3366 = vmatprep.subr.bf16.mxu1 %v3365_v49  ;;  %v2382_v8 = vld [vmem:[%s4735_s3 + $0x470] sm:$0xff] }
 0x159   :  { %3056 = vmatprep.mubr.f32.mxu0 %v4020_v12  ;;  %3460 = vmatpush3.bf16.msra.mxu0 %v4261_v46  ;;  %v4320_v33 = vpack.c.bf16 %v2383_v47, %v2382_v8 }
 0x15a   :  { %2889 = vmatmul.mubr.f32.gmra.mrb[42].mxu1 %v4020_v12  ;;  %3462 = vmatprep.subr.bf16.mxu0 %v4280_v2  ;;  %v3373_v12 = vpack.c.bf16 %v2335_v29, %v2334_v37 }
 0x15b   :  { %3368 = vmatpush3.bf16.msra.mxu1 %v3365_v49  ;;  %2891 = vmatprep.mubr.f32.mxu1 %v4031_v25  ;;  %v1708_v49 = vld [vmem:[#allocation2 + $0x61] sm:$0xff] }
 0x15c   :  { %3057 = vmatmul.mubr.f32.gmra.mrb[74].mxu0 %v4031_v25  ;;  %3370 = vmatprep.subr.bf16.mxu1 %v3369_v13  ;;  %v2353_v25 = vld [vmem:[%s4735_s3 + $0x388] sm:$0xff] }
 0x15d   :  { %3059 = vmatprep.mubr.f32.mxu0 %v4040_v31  ;;  %3464 = vmatpush3.bf16.msra.mxu0 %v4280_v2 }
 0x15e   :  { %2892 = vmatmul.mubr.f32.gmra.mrb[44].mxu1 %v4040_v31  ;;  %3466 = vmatprep.subr.bf16.mxu0 %v4306_v41  ;;  %v3409_v31 = vpack.c.bf16 %v2353_v25, %v2352_v57 }
 0x15f   :  { %3372 = vmatpush3.bf16.msra.mxu1 %v3369_v13  ;;  %2894 = vmatprep.mubr.f32.mxu1 %v4051_v44 }
 0x160   :  { %3060 = vmatmul.mubr.f32.gmra.mrb[76].mxu0 %v4051_v44  ;;  %3374 = vmatprep.subr.bf16.mxu1 %v3373_v12  ;;  %v3413_v44 = vpack.c.bf16 %v2355_v4, %v2354_v43 }
 0x161   :  { %3468 = vmatpush3.bf16.msra.mxu0 %v4306_v41  ;;  %3062 = vmatprep.mubr.f32.mxu0 %v1524_v26 }
 0x162   :  { %2895 = vmatmul.mubr.f32.gmra.mrb[46].mxu1 %v1524_v26  ;;  %3470 = vmatprep.subr.bf16.mxu0 %v4320_v33 }
 0x163   :  { %3376 = vmatpush3.bf16.msra.mxu1 %v3373_v12  ;;  %2985 = vmatprep.mubr.f32.mxu1 %v3825_v38  ;;  %v3417_v38 = vpack.c.bf16 %v2357_v51, %v2356_v36 }
 0x164   :  { %3063 = vmatmul.mubr.f32.gmra.mrb[78].mxu0 %v3492_v34  ;;  %3410 = vmatprep.subr.bf16.mxu1 %v3409_v31  ;;  %v2366_v34 = vld [vmem:[%s4735_s3 + $0x3f0] sm:$0xff] }
 0x165   :  { %3153 = vmatprep.mubr.f32.mxu0 %v3848_v48  ;;  %3472 = vmatpush3.bf16.msra.mxu0 %v4320_v33 }
 0x166   :  { %2986 = vmatmul.mubr.f32.vlgmr.msra.gmra.mrb[48].mxu1 %v3848_v48  ;;  %v3421_v48 = vpack.c.bf16 %v2359_v54, %v2358_v14 }
 0x167   :  { %3412 = vmatpush3.bf16.msra.mxu1 %v3409_v31  ;;  %2988 = vmatprep.mubr.f32.mxu1 %v3871_v58 }
 0x168   :  { %3154 = vmatmul.mubr.f32.vlgmr.msra.gmra.mrb[80].mxu0 %v3871_v58  ;;  %3414 = vmatprep.subr.bf16.mxu1 %v3413_v44  ;;  %v2360_v58 = vld [vmem:[%s4735_s3 + $0x3c0] sm:$0xff] }
 0x169   :  { %3156 = vmatprep.mubr.f32.mxu0 %v3894_v5 }
 0x16a   :  { %2989 = vmatmul.mubr.f32.gmra.mrb[50].mxu1 %v3894_v5  ;;  %v1904_v5 = vld [vmem:[#allocation2 + $0x82] sm:$0xff] }
 0x16b   :  { %3416 = vmatpush3.bf16.msra.mxu1 %v3413_v44  ;;  %2991 = vmatprep.mubr.f32.mxu1 %v3917_v15 }
 0x16c   :  { %3157 = vmatmul.mubr.f32.gmra.mrb[82].mxu0 %v3917_v15  ;;  %3418 = vmatprep.subr.bf16.mxu1 %v3417_v38  ;;  %v3425_v15 = vpack.c.bf16 %v2361_v21, %v2360_v58  ;;  %v4749_v21 = vld [vmem:[#allocation3_spill] sm:$0xff] }
 0x16d   :  { %3159 = vmatprep.mubr.f32.mxu0 %v3931_v22 }
 0x16e   :  { %2992 = vmatmul.mubr.f32.gmra.mrb[52].mxu1 %v3931_v22  ;;  %v3429_v22 = vpack.c.bf16 %v2363_v61, %v2362_v1 }
 0x16f   :  { %3420 = vmatpush3.bf16.msra.mxu1 %v3417_v38  ;;  %2994 = vmatprep.mubr.f32.mxu1 %v3954_v35 }
 0x170   :  { %3160 = vmatmul.mubr.f32.gmra.mrb[84].mxu0 %v3954_v35  ;;  %3422 = vmatprep.subr.bf16.mxu1 %v3421_v48  ;;  %v2364_v35 = vld [vmem:[%s4735_s3 + $0x3e0] sm:$0xff] }
 0x171   :  { %3162 = vmatprep.mubr.f32.mxu0 %v1904_v5 }
 0x172   :  { %2995 = vmatmul.mubr.f32.gmra.mrb[54].mxu1 %v1904_v5 }
 0x173   :  { %3424 = vmatpush3.bf16.msra.mxu1 %v3421_v48  ;;  %2997 = vmatprep.mubr.f32.mxu1 %v3987_v59  ;;  %v3433_v59 = vpack.c.bf16 %v2365_v62, %v2364_v35  ;;  %v4748_v48 = vld [vmem:[#allocation4_spill] sm:$0xff]  ;;  %v4751_v62 = vld [vmem:[#allocation5_spill] sm:$0xff] }
 0x174   :  { %3163 = vmatmul.mubr.f32.gmra.mrb[86].mxu0 %v1905_v55  ;;  %3426 = vmatprep.subr.bf16.mxu1 %v3425_v15 }
 0x175   :  { %3165 = vmatprep.mubr.f32.mxu0 %v4000_v0 }
 0x176   :  { %2998 = vmatmul.mubr.f32.gmra.mrb[56].mxu1 %v4000_v0  ;;  %v3437_v0 = vpack.c.bf16 %v2367_v56, %v2366_v34 }
 0x177   :  { %3428 = vmatpush3.bf16.msra.mxu1 %v3425_v15  ;;  %3000 = vmatprep.mubr.f32.mxu1 %v4011_v9 }
 0x178   :  { %3166 = vmatmul.mubr.f32.gmra.mrb[88].mxu0 %v4011_v9  ;;  %3430 = vmatprep.subr.bf16.mxu1 %v3429_v22  ;;  %v1330_v9 = vld [vmem:[#allocation2 + $0x122] sm:$0xff] }
 0x179   :  { %3168 = vmatprep.mubr.f32.mxu0 %v4022_v16 }
 0x17a   :  { %3001 = vmatmul.mubr.f32.gmra.mrb[58].mxu1 %v4022_v16  ;;  %v1704_v16 = vld [vmem:[#allocation2 + $0x21] sm:$0xff] }
 0x17b   :  { %3432 = vmatpush3.bf16.msra.mxu1 %v3429_v22  ;;  %3003 = vmatprep.mubr.f32.mxu1 %v4033_v28  ;;  %v4750_v22 = vld [vmem:[#allocation6_spill] sm:$0xff] }
 0x17c   :  { %3169 = vmatmul.mubr.f32.gmra.mrb[90].mxu0 %v4033_v28  ;;  %3434 = vmatprep.subr.bf16.mxu1 %v3433_v59  ;;  %v1705_v28 = vld [vmem:[#allocation2 + $0x31] sm:$0xff] }
 0x17d   :  { %3171 = vmatprep.mubr.f32.mxu0 %v4042_v32 }
 0x17e   :  { %3004 = vmatmul.mubr.f32.gmra.mrb[60].mxu1 %v4042_v32  ;;  %v1707_v32 = vld [vmem:[#allocation2 + $0x51] sm:$0xff] }
 0x17f   :  { %3436 = vmatpush3.bf16.msra.mxu1 %v3433_v59  ;;  %3006 = vmatprep.mubr.f32.mxu1 %v4053_v45 }
 0x180   :  { %3172 = vmatmul.mubr.f32.gmra.mrb[92].mxu0 %v4053_v45  ;;  %3438 = vmatprep.subr.bf16.mxu1 %v3437_v0  ;;  %v1709_v45 = vld [vmem:[#allocation2 + $0x71] sm:$0xff] }
 0x182   :  { %3007 = vmatmul.mubr.f32.gmra.mrb[62].mxu1 %v1330_v9 }
 0x183   :  { %3440 = vmatpush3.bf16.msra.mxu1 %v3437_v0  ;;  %3097 = vmatprep.mubr.f32.mxu1 %v1704_v16 }
 0x184   :  { %3473 = vmatprep.subr.bf16.mxu1 %v4183_v42 }
 0x186   :  { %3098 = vmatmul.mubr.f32.vlgmr.msra.gmra.mrb[64].mxu1 %v1705_v28 }
 0x187   :  { %3481 = vmatpush3.bf16.msra.mxu1 %v4183_v42  ;;  %3100 = vmatprep.mubr.f32.mxu1 %v1706_v18  ;;  %v1712_v42 = vld [vmem:[#allocation2 + $0xc1] sm:$0xff] }
 0x188   :  { %3474 = vmatprep.subr.bf16.mxu1 %v4203_v20  ;;  %v4752_v18 = vld [vmem:[#allocation8_spill] sm:$0xff] }
 0x18a   :  { %3101 = vmatmul.mubr.f32.gmra.mrb[66].mxu1 %v1707_v32 }
 0x18b   :  { %3482 = vmatpush3.bf16.msra.mxu1 %v4203_v20  ;;  %3103 = vmatprep.mubr.f32.mxu1 %v1708_v49  ;;  %v1713_v20 = vld [vmem:[#allocation2 + $0xd1] sm:$0xff]  ;;  %v4753_v49 = vld [vmem:[#allocation7_spill] sm:$0xff] }
 0x18c   :  { %3475 = vmatprep.subr.bf16.mxu1 %v4223_v52 }
 0x18e   :  { %3104 = vmatmul.mubr.f32.gmra.mrb[68].mxu1 %v1709_v45 }
 0x18f   :  { %3483 = vmatpush3.bf16.msra.mxu1 %v4223_v52  ;;  %3106 = vmatprep.mubr.f32.mxu1 %v1710_v10  ;;  %v1719_v52 = vld [vmem:[#allocation2 + $0x131] sm:$0xff] }
 0x190   :  { %3476 = vmatprep.subr.bf16.mxu1 %v4243_v53 }
 0x192   :  { %3107 = vmatmul.mubr.f32.gmra.mrb[70].mxu1 %v1711_v3 }
 0x193   :  { %3484 = vmatpush3.bf16.msra.mxu1 %v4243_v53  ;;  %3109 = vmatprep.mubr.f32.mxu1 %v1712_v42 }
 0x194   :  { %3477 = vmatprep.subr.bf16.mxu1 %v4261_v46 }
 0x196   :  { %3110 = vmatmul.mubr.f32.gmra.mrb[72].mxu1 %v1713_v20 }
 0x197   :  { %3485 = vmatpush3.bf16.msra.mxu1 %v4261_v46  ;;  %3112 = vmatprep.mubr.f32.mxu1 %v1714_v23 }
 0x198   :  { %3478 = vmatprep.subr.bf16.mxu1 %v4280_v2 }
 0x19a   :  { %3113 = vmatmul.mubr.f32.gmra.mrb[74].mxu1 %v4007_v6  ;;  %v1913_v6 = vld [vmem:[#allocation2 + $0x132] sm:$0xff] }
 0x19b   :  { %3486 = vmatpush3.bf16.msra.mxu1 %v4280_v2  ;;  %3115 = vmatprep.mubr.f32.mxu1 %v4018_v11  ;;  %v2255_v11 = vld [vmem:[%s4736_s2] ss:$0 sm:$0xff] }
 0x19c   :  { %3479 = vmatprep.subr.bf16.mxu1 %v4306_v41  ;;  %v274_v53 = vadd.f32 %v2255_v11, %v3810_v30  ;;  %v276_v29 = vadd.f32 %v2255_v11, %v3854_v50  ;;  %v277_v57 = vadd.f32 %v2255_v11, %v3877_v60  ;;  %v280_v44 = vadd.f32 %v2255_v11, %v3937_v27 }
 0x19d   :  { %v279_v36 = vadd.f32 %v2255_v11, %v3923_v17  ;;  %v282_v58 = vadd.f32 %v2255_v11, %v4748_v48  ;;  %v281_v5 = vadd.f32 %v2255_v11, %v4749_v21  ;;  %v284_v35 = vadd.f32 %v2255_v11, %v4750_v22 }
 0x19e   :  { %3116 = vmatmul.mubr.f32.gmra.mrb[76].mxu1 %v4029_v19  ;;  %v273_v19 = vadd.f32 %v2255_v11, %v3793_v24  ;;  %v283_v59 = vadd.f32 %v2255_v11, %v4751_v62  ;;  %v286_v32 = vadd.f32 %v2255_v11, %v4752_v18  ;;  %v285_v45 = vadd.f32 %v2255_v11, %v4753_v49 }
 0x19f   :  { %3487 = vmatpush3.bf16.msra.mxu1 %v4306_v41  ;;  %3118 = vmatprep.mubr.f32.mxu1 %v4044_v39  ;;  %v275_v41 = vadd.f32 %v2255_v11, %v3831_v40 }
 0x1a0   :  { %3480 = vmatprep.subr.bf16.mxu1 %v4320_v33 }
 0x1a2   :  { %3119 = vmatmul.mubr.f32.gmra.mrb[78].mxu1 %v1719_v52 }
 0x1a3   :  { %3488 = vmatpush3.bf16.msra.mxu1 %v4320_v33  ;;  %3174 = vmatprep.mubr.f32.mxu1 %v1330_v9  ;;  %v278_v33 = vadd.f32 %v2255_v11, %v3900_v7 }
 0x1a6   :  { %3175 = vmatmul.mubr.f32.vlgmr.msra.gmra.mrb[80].mxu1 %v1913_v6  ;;  %v4754_v6 = vld [vmem:[#allocation10_spill] sm:$0xff] }
 0x1bd   :  { %v2707_v46 = vpop.f32.mrb[0].mxu1 }
 0x1be   :  { %v4426_v2 = vpop.f32.mrb[32].mxu0  ;;  %v524_v39 = vadd.f32 %v2707_v46, %v274_v53  ;;  %v444_v63 = vpop.f32.mrb[1].mxu1  ;;  %v288_v53 = vadd.f32 %v2255_v11, %v4754_v6 }
 0x1bf   :  { %v4428_v13 = vpop.f32.mrb[33].mxu0  ;;  %v523_v37 = vadd.f32 %v444_v63, %v273_v19  ;;  %v4755_v19 = vld [vmem:[#allocation9_spill] sm:$0xff] }
 0x1c0   :  { %v287_v46 = vadd.f32 %v2255_v11, %v4755_v19 }
 0x1c5   :  { %v2710_v8 = vpop.f32.mrb[2].mxu1 }
 0x1c6   :  { %v4432_v47 = vpop.f32.mrb[34].mxu0  ;;  %v526_v12 = vadd.f32 %v2710_v8, %v276_v29  ;;  %v454_v26 = vpop.f32.mrb[3].mxu1 }
 0x1c7   :  { %v4434_v30 = vpop.f32.mrb[35].mxu0  ;;  %v525_v24 = vadd.f32 %v454_v26, %v275_v41 }
 0x1cd   :  { %v2713_v25 = vpop.f32.mrb[4].mxu1 }
 0x1ce   :  { %v4438_v31 = vpop.f32.mrb[36].mxu0  ;;  %v528_v43 = vadd.f32 %v2713_v25, %v278_v33  ;;  %v464_v4 = vpop.f32.mrb[5].mxu1 }
 0x1cf   :  { %v4440_v50 = vpop.f32.mrb[37].mxu0  ;;  %v527_v40 = vadd.f32 %v464_v4, %v277_v57 }
 0x1d5   :  { %v2716_v51 = vpop.f32.mrb[6].mxu1 }
 0x1d6   :  { %v4444_v38 = vpop.f32.mrb[38].mxu0  ;;  %v530_v14 = vadd.f32 %v2716_v51, %v280_v44  ;;  %v474_v54 = vpop.f32.mrb[7].mxu1 }
 0x1d7   :  { %v4446_v7 = vpop.f32.mrb[39].mxu0  ;;  %v529_v60 = vadd.f32 %v474_v54, %v279_v36 }
 0x1dd   :  { %v2719_v15 = vpop.f32.mrb[8].mxu1 }
 0x1de   :  { %v4450_v55 = vpop.f32.mrb[40].mxu0  ;;  %v532_v1 = vadd.f32 %v2719_v15, %v282_v58  ;;  %v484_v61 = vpop.f32.mrb[9].mxu1 }
 0x1df   :  { %v4452_v27 = vpop.f32.mrb[41].mxu0  ;;  %v531_v17 = vadd.f32 %v484_v61, %v281_v5 }
 0x1e5   :  { %v2722_v34 = vpop.f32.mrb[10].mxu1 }
 0x1e6   :  { %v4456_v56 = vpop.f32.mrb[42].mxu0  ;;  %v534_v0 = vadd.f32 %v2722_v34, %v284_v35  ;;  %v494_v9 = vpop.f32.mrb[11].mxu1 }
 0x1e7   :  { %v4458_v16 = vpop.f32.mrb[43].mxu0  ;;  %v533_v28 = vadd.f32 %v494_v9, %v283_v59 }
 0x1ed   :  { %v2725_v10 = vpop.f32.mrb[12].mxu1 }
 0x1ee   :  { %v4462_v3 = vpop.f32.mrb[44].mxu0  ;;  %v536_v42 = vadd.f32 %v2725_v10, %v286_v32  ;;  %v504_v20 = vpop.f32.mrb[13].mxu1 }
 0x1ef   :  { %v4464_v23 = vpop.f32.mrb[45].mxu0  ;;  %v535_v52 = vadd.f32 %v504_v20, %v285_v45 }
 0x1f5   :  { %v2728_v63 = vpop.f32.mrb[14].mxu1 }
 0x1f6   :  { %v4468_v29 = vpop.f32.mrb[46].mxu0  ;;  %v538_v41 = vadd.f32 %v2728_v63, %v288_v53  ;;  %v514_v8 = vpop.f32.mrb[15].mxu1 }
 0x1f7   :  { %v4470_v26 = vpop.f32.mrb[47].mxu0  ;;  %v537_v33 = vadd.f32 %v514_v8, %v287_v46 }
 0x1f9   :  { %v2763_v57 = vpop.f32.mrb[16].mxu1 }
 0x1fa   :  { %v4472_v25 = vpop.f32.mrb[48].mxu0  ;;  %v718_v4 = vadd.f32 %v2763_v57, %v524_v39  ;;  %v638_v44 = vpop.f32.mrb[17].mxu1 }
 0x1fb   :  { %v4474_v36 = vpop.f32.mrb[49].mxu0  ;;  %v717_v51 = vadd.f32 %v638_v44, %v523_v37 }
 0x1fc   :  { %v912_v54 = vadd.f32 %v4426_v2, %v718_v4 }
 0x1fd   :  { %v2766_v48 = vpop.f32.mrb[18].mxu1  ;;  %v911_v58 = vadd.f32 %v4428_v13, %v717_v51 }
 0x1fe   :  { %v4477_v11 = vpop.f32.mrb[50].mxu0  ;;  %v720_v21 = vadd.f32 %v2766_v48, %v526_v12  ;;  %v648_v5 = vpop.f32.mrb[19].mxu1 }
 0x1ff   :  { %v4480_v15 = vpop.f32.mrb[51].mxu0  ;;  %v719_v61 = vadd.f32 %v648_v5, %v525_v24 }
 0x200   :  { %v914_v22 = vadd.f32 %v4432_v47, %v720_v21 }
 0x201   :  { %v2769_v35 = vpop.f32.mrb[20].mxu1  ;;  %v913_v62 = vadd.f32 %v4434_v30, %v719_v61 }
 0x202   :  { %v4483_v39 = vpop.f32.mrb[52].mxu0  ;;  %v722_v37 = vadd.f32 %v2769_v35, %v528_v43  ;;  %v658_v59 = vpop.f32.mrb[21].mxu1 }
 0x203   :  { %v4486_v2 = vpop.f32.mrb[53].mxu0  ;;  %v721_v34 = vadd.f32 %v658_v59, %v527_v40 }
 0x204   :  { %v916_v9 = vadd.f32 %v4438_v31, %v722_v37 }
 0x205   :  { %v2772_v13 = vpop.f32.mrb[22].mxu1  ;;  %v915_v18 = vadd.f32 %v4440_v50, %v721_v34 }
 0x206   :  { %v4489_v12 = vpop.f32.mrb[54].mxu0  ;;  %v724_v24 = vadd.f32 %v2772_v13, %v530_v14  ;;  %v668_v32 = vpop.f32.mrb[23].mxu1 }
 0x207   :  { %v4492_v47 = vpop.f32.mrb[55].mxu0  ;;  %v723_v49 = vadd.f32 %v668_v32, %v529_v60 }
 0x208   :  { %v918_v45 = vadd.f32 %v4444_v38, %v724_v24 }
 0x209   :  { %v2775_v30 = vpop.f32.mrb[24].mxu1  ;;  %v917_v10 = vadd.f32 %v4446_v7, %v723_v49 }
 0x20a   :  { %v4495_v43 = vpop.f32.mrb[56].mxu0  ;;  %v726_v40 = vadd.f32 %v2775_v30, %v532_v1  ;;  %v678_v20 = vpop.f32.mrb[25].mxu1 }
 0x20b   :  { %v4498_v31 = vpop.f32.mrb[57].mxu0  ;;  %v725_v6 = vadd.f32 %v678_v20, %v531_v17 }
 0x20c   :  { %v920_v53 = vadd.f32 %v4450_v55, %v726_v40 }
 0x20d   :  { %v2778_v50 = vpop.f32.mrb[26].mxu1  ;;  %v919_v19 = vadd.f32 %v4452_v27, %v725_v6 }
 0x20e   :  { %v4501_v14 = vpop.f32.mrb[58].mxu0  ;;  %v728_v60 = vadd.f32 %v2778_v50, %v534_v0  ;;  %v688_v46 = vpop.f32.mrb[27].mxu1 }
 0x20f   :  { %v4504_v38 = vpop.f32.mrb[59].mxu0  ;;  %v727_v63 = vadd.f32 %v688_v46, %v533_v28 }
 0x210   :  { %v922_v8 = vadd.f32 %v4456_v56, %v728_v60 }
 0x211   :  { %v2781_v7 = vpop.f32.mrb[28].mxu1  ;;  %v921_v57 = vadd.f32 %v4458_v16, %v727_v63 }
 0x212   :  { %v4507_v1 = vpop.f32.mrb[60].mxu0  ;;  %v730_v17 = vadd.f32 %v2781_v7, %v536_v42  ;;  %v698_v4 = vpop.f32.mrb[29].mxu1 }
 0x213   :  { %v4510_v55 = vpop.f32.mrb[61].mxu0  ;;  %v729_v44 = vadd.f32 %v698_v4, %v535_v52 }
 0x214   :  { %v924_v51 = vadd.f32 %v4462_v3, %v730_v17 }
 0x215   :  { %v2784_v27 = vpop.f32.mrb[30].mxu1  ;;  %v923_v48 = vadd.f32 %v4464_v23, %v729_v44 }
 0x216   :  { %v4513_v0 = vpop.f32.mrb[62].mxu0  ;;  %v732_v28 = vadd.f32 %v2784_v27, %v538_v41  ;;  %v708_v21 = vpop.f32.mrb[31].mxu1 }
 0x217   :  { %v4516_v56 = vpop.f32.mrb[63].mxu0  ;;  %v731_v5 = vadd.f32 %v708_v21, %v537_v33 }
 0x218   :  { %v926_v61 = vadd.f32 %v4468_v29, %v732_v28 }
 0x219   :  { %v2875_v16 = vpop.f32.mrb[32].mxu1  ;;  %v925_v42 = vadd.f32 %v4470_v26, %v731_v5 }
 0x21a   :  { %v1106_v35 = vadd.f32 %v2875_v16, %v912_v54  ;;  %v1026_v52 = vpop.f32.mrb[33].mxu1 }
 0x21b   :  { %v4520_v37 = vpop.f32.mrb[64].mxu0  ;;  %v1105_v3 = vadd.f32 %v1026_v52, %v911_v58 }
 0x21c   :  { %v4522_v59 = vpop.f32.mrb[65].mxu0  ;;  %v1300_v34 = vadd.f32 %v4472_v25, %v1106_v35 }
 0x21d   :  { %v2878_v23 = vpop.f32.mrb[34].mxu1  ;;  %v1299_v41 = vadd.f32 %v4474_v36, %v1105_v3 }
 0x21e   :  { %v1108_v13 = vadd.f32 %v2878_v23, %v914_v22  ;;  %v1036_v33 = vpop.f32.mrb[35].mxu1 }
 0x21f   :  { %v4526_v24 = vpop.f32.mrb[66].mxu0  ;;  %v1107_v29 = vadd.f32 %v1036_v33, %v913_v62 }
 0x220   :  { %v4528_v32 = vpop.f32.mrb[67].mxu0  ;;  %v1302_v26 = vadd.f32 %v4477_v11, %v1108_v13 }
 0x221   :  { %v2881_v54 = vpop.f32.mrb[36].mxu1  ;;  %v1301_v49 = vadd.f32 %v4480_v15, %v1107_v29 }
 0x222   :  { %v1110_v58 = vadd.f32 %v2881_v54, %v916_v9  ;;  %v1046_v40 = vpop.f32.mrb[37].mxu1 }
 0x223   :  { %v4532_v30 = vpop.f32.mrb[68].mxu0  ;;  %v1109_v25 = vadd.f32 %v1046_v40, %v915_v18 }
 0x224   :  { %v4534_v20 = vpop.f32.mrb[69].mxu0  ;;  %v1304_v36 = vadd.f32 %v4483_v39, %v1110_v58 }
 0x225   :  { %v2884_v22 = vpop.f32.mrb[38].mxu1  ;;  %v1303_v6 = vadd.f32 %v4486_v2, %v1109_v25 }
 0x226   :  { %v1112_v62 = vadd.f32 %v2884_v22, %v918_v45  ;;  %v1056_v50 = vpop.f32.mrb[39].mxu1 }
 0x227   :  { %v4538_v60 = vpop.f32.mrb[70].mxu0  ;;  %v1111_v11 = vadd.f32 %v1056_v50, %v917_v10 }
 0x228   :  { %v4540_v46 = vpop.f32.mrb[71].mxu0  ;;  %v1306_v15 = vadd.f32 %v4489_v12, %v1112_v62 }
 0x229   :  { %v2887_v9 = vpop.f32.mrb[40].mxu1  ;;  %v1305_v63 = vadd.f32 %v4492_v47, %v1111_v11 }
 0x22a   :  { %v1114_v18 = vadd.f32 %v2887_v9, %v920_v53  ;;  %v1066_v17 = vpop.f32.mrb[41].mxu1 }
 0x22b   :  { %v4544_v7 = vpop.f32.mrb[72].mxu0  ;;  %v1113_v39 = vadd.f32 %v1066_v17, %v919_v19 }
 0x22c   :  { %v4546_v4 = vpop.f32.mrb[73].mxu0  ;;  %v1308_v2 = vadd.f32 %v4495_v43, %v1114_v18 }
 0x22d   :  { %v2890_v45 = vpop.f32.mrb[42].mxu1  ;;  %v1307_v44 = vadd.f32 %v4498_v31, %v1113_v39 }
 0x22e   :  { %v1116_v10 = vadd.f32 %v2890_v45, %v922_v8  ;;  %v1076_v28 = vpop.f32.mrb[43].mxu1 }
 0x22f   :  { %v4550_v27 = vpop.f32.mrb[74].mxu0  ;;  %v1115_v12 = vadd.f32 %v1076_v28, %v921_v57 }
 0x230   :  { %v4552_v21 = vpop.f32.mrb[75].mxu0  ;;  %v1310_v47 = vadd.f32 %v4501_v14, %v1116_v10 }
 0x231   :  { %v2893_v53 = vpop.f32.mrb[44].mxu1  ;;  %v1309_v5 = vadd.f32 %v4504_v38, %v1115_v12 }
 0x232   :  { %v1118_v19 = vadd.f32 %v2893_v53, %v924_v51  ;;  %v1086_v35 = vpop.f32.mrb[45].mxu1 }
 0x233   :  { %v4556_v16 = vpop.f32.mrb[76].mxu0  ;;  %v1117_v43 = vadd.f32 %v1086_v35, %v923_v48 }
 0x234   :  { %v4558_v52 = vpop.f32.mrb[77].mxu0  ;;  %v1312_v31 = vadd.f32 %v4507_v1, %v1118_v19 }
 0x235   :  { %v2896_v8 = vpop.f32.mrb[46].mxu1  ;;  %v1311_v3 = vadd.f32 %v4510_v55, %v1117_v43 }
 0x236   :  { %v1120_v57 = vadd.f32 %v2896_v8, %v926_v61  ;;  %v1096_v23 = vpop.f32.mrb[47].mxu1 }
 0x237   :  { %v4562_v13 = vpop.f32.mrb[78].mxu0  ;;  %v1119_v14 = vadd.f32 %v1096_v23, %v925_v42 }
 0x238   :  { %v4564_v33 = vpop.f32.mrb[79].mxu0  ;;  %v1314_v38 = vadd.f32 %v4513_v0, %v1120_v57 }
 0x239   :  { %v2987_v51 = vpop.f32.mrb[48].mxu1  ;;  %v1313_v29 = vadd.f32 %v4516_v56, %v1119_v14 }
 0x23a   :  { %v1494_v48 = vadd.f32 %v2987_v51, %v1300_v34  ;;  %v1414_v54 = vpop.f32.mrb[49].mxu1 }
 0x23b   :  { %v4568_v58 = vpop.f32.mrb[80].mxu0  ;;  %v1493_v1 = vadd.f32 %v1414_v54, %v1299_v41 }
 0x23c   :  { %v1997_v40 = vpop.f32.mrb[81].mxu0  ;;  %v1689_v55 = vadd.f32 %v4520_v37, %v1494_v48 }
 0x23d   :  { %v2990_v61 = vpop.f32.mrb[50].mxu1  ;;  %v1688_v25 = vadd.f32 %v4522_v59, %v1493_v1 }
 0x23e   :  { %v1496_v22 = vadd.f32 %v2990_v61, %v1302_v26  ;;  %v1424_v42 = vpop.f32.mrb[51].mxu1 }
 0x23f   :  { %v3158_v62 = vpop.f32.mrb[82].mxu0  ;;  %v1495_v50 = vadd.f32 %v1424_v42, %v1301_v49 }
 0x240   :  { %v2007_v11 = vpop.f32.mrb[83].mxu0  ;;  %v1691_v0 = vadd.f32 %v4526_v24, %v1496_v22 }
 0x241   :  { %v2993_v9 = vpop.f32.mrb[52].mxu1  ;;  %v1690_v56 = vadd.f32 %v4528_v32, %v1495_v50 }
 0x242   :  { %v1498_v34 = vadd.f32 %v2993_v9, %v1304_v36  ;;  %v1434_v18 = vpop.f32.mrb[53].mxu1 }
 0x243   :  { %v3161_v17 = vpop.f32.mrb[84].mxu0  ;;  %v1497_v41 = vadd.f32 %v1434_v18, %v1303_v6 }
 0x244   :  { %v2017_v39 = vpop.f32.mrb[85].mxu0  ;;  %v1693_v37 = vadd.f32 %v4532_v30, %v1498_v34 }
 0x245   :  { %v2996_v45 = vpop.f32.mrb[54].mxu1  ;;  %v1692_v59 = vadd.f32 %v4534_v20, %v1497_v41 }
 0x246   :  { %v1500_v26 = vadd.f32 %v2996_v45, %v1306_v15  ;;  %v1444_v10 = vpop.f32.mrb[55].mxu1 }
 0x247   :  { %v1499_v28 = vadd.f32 %v1444_v10, %v1305_v63  ;;  %v3164_v49 = vpop.f32.mrb[86].mxu0 }
 0x248   :  { %v2027_v12 = vpop.f32.mrb[87].mxu0  ;;  %v1695_v24 = vadd.f32 %v4538_v60, %v1500_v26 }
 0x249   :  { %v2999_v53 = vpop.f32.mrb[56].mxu1  ;;  %v1694_v32 = vadd.f32 %v4540_v46, %v1499_v28 }
 0x24a   :  { %v1502_v36 = vadd.f32 %v2999_v53, %v1308_v2  ;;  %v1454_v19 = vpop.f32.mrb[57].mxu1 }
 0x24b   :  { %v3167_v35 = vpop.f32.mrb[88].mxu0  ;;  %v1501_v6 = vadd.f32 %v1454_v19, %v1307_v44 }
 0x24c   :  { %v2037_v43 = vpop.f32.mrb[89].mxu0  ;;  %v1697_v30 = vadd.f32 %v4544_v7, %v1502_v36 }
 0x24d   :  { %v3002_v8 = vpop.f32.mrb[58].mxu1  ;;  %v1696_v20 = vadd.f32 %v4546_v4, %v1501_v6 }
 0x24e   :  { %v1504_v15 = vadd.f32 %v3002_v8, %v1310_v47  ;;  %v1464_v57 = vpop.f32.mrb[59].mxu1 }
 0x24f   :  { %v3170_v63 = vpop.f32.mrb[90].mxu0  ;;  %v1503_v23 = vadd.f32 %v1464_v57, %v1309_v5 }
 0x250   :  { %v2047_v14 = vpop.f32.mrb[91].mxu0  ;;  %v1699_v60 = vadd.f32 %v4550_v27, %v1504_v15 }
 0x251   :  { %v3005_v51 = vpop.f32.mrb[60].mxu1  ;;  %v1698_v46 = vadd.f32 %v4552_v21, %v1503_v23 }
 0x252   :  { %v1506_v2 = vadd.f32 %v3005_v51, %v1312_v31  ;;  %v1474_v48 = vpop.f32.mrb[61].mxu1 }
 0x253   :  { %v3173_v54 = vpop.f32.mrb[92].mxu0  ;;  %v1505_v44 = vadd.f32 %v1474_v48, %v1311_v3 }
 0x254   :  { %v2057_v1 = vpop.f32.mrb[93].mxu0  ;;  %v1701_v7 = vadd.f32 %v4556_v16, %v1506_v2 }
 0x255   :  { %v3008_v61 = vpop.f32.mrb[62].mxu1  ;;  %v1700_v4 = vadd.f32 %v4558_v52, %v1505_v44 }
 0x256   :  { %v1508_v47 = vadd.f32 %v3008_v61, %v1314_v38  ;;  %v1484_v22 = vpop.f32.mrb[63].mxu1 }
 0x257   :  { %v1507_v42 = vadd.f32 %v1484_v22, %v1313_v29 }
 0x258   :  { %v1703_v5 = vadd.f32 %v4562_v13, %v1508_v47 }
 0x259   :  { %v3099_v50 = vpop.f32.mrb[64].mxu1  ;;  %v1702_v27 = vadd.f32 %v4564_v33, %v1507_v42 }
 0x25a   :  { %v1883_v9 = vadd.f32 %v3099_v50, %v1689_v55  ;;  %v1803_v21 = vpop.f32.mrb[65].mxu1 }
 0x25b   :  { %v1882_v31 = vadd.f32 %v1803_v21, %v1688_v25 }
 0x25c   :  { %v4587_v34 = vadd.f32 %v4568_v58, %v1883_v9 }
 0x25d   :  { %v4589_v3 = vadd.f32 %v1997_v40, %v1882_v31  ;;  %v3102_v16 = vpop.f32.mrb[66].mxu1 }
 0x25e   :  { %v1885_v18 = vadd.f32 %v3102_v16, %v1691_v0  ;;  %v1813_v41 = vpop.f32.mrb[67].mxu1 }
 0x25f   :  { %v2092_v52 = vadd.f32 %v4587_v34, %v4589_v3  ;;  %v1884_v38 = vadd.f32 %v1813_v41, %v1690_v56 }
 0x260   :  { %v4593_v29 = vadd.f32 %v3158_v62, %v1885_v18 }
 0x261   :  { %v2078_v13 = vadd.f32 %v2007_v11, %v1884_v38  ;;  %v3105_v45 = vpop.f32.mrb[68].mxu1 }
 0x262   :  { %v1887_v33 = vadd.f32 %v3105_v45, %v1693_v37  ;;  %v1823_v55 = vpop.f32.mrb[69].mxu1 }
 0x263   :  { %v2093_v26 = vadd.f32 %v2092_v52, %v2078_v13  ;;  %v1886_v25 = vadd.f32 %v1823_v55, %v1692_v59 }
 0x264   :  { %v2081_v10 = vadd.f32 %v3161_v17, %v1887_v33 }
 0x265   :  { %v2080_v58 = vadd.f32 %v2017_v39, %v1886_v25  ;;  %v2094_v40 = vadd.f32 %v2093_v26, %v4593_v29  ;;  %v3108_v28 = vpop.f32.mrb[70].mxu1 }
 0x266   :  { %v1889_v53 = vadd.f32 %v3108_v28, %v1695_v24  ;;  %v1833_v0 = vpop.f32.mrb[71].mxu1 }
 0x267   :  { %v2095_v36 = vadd.f32 %v2094_v40, %v2080_v58  ;;  %v1888_v19 = vadd.f32 %v1833_v0, %v1694_v32 }
 0x268   :  { %v2083_v6 = vadd.f32 %v3164_v49, %v1889_v53 }
 0x269   :  { %v2082_v8 = vadd.f32 %v2027_v12, %v1888_v19  ;;  %v2096_v56 = vadd.f32 %v2095_v36, %v2081_v10  ;;  %v3111_v62 = vpop.f32.mrb[72].mxu1 }
 0x26a   :  { %v1891_v15 = vadd.f32 %v3111_v62, %v1697_v30  ;;  %v1843_v11 = vpop.f32.mrb[73].mxu1 }
 0x26b   :  { %v2097_v57 = vadd.f32 %v2096_v56, %v2082_v8  ;;  %v1890_v37 = vadd.f32 %v1843_v11, %v1696_v20 }
 0x26c   :  { %v2085_v23 = vadd.f32 %v3167_v35, %v1891_v15 }
 0x26d   :  { %v2084_v51 = vadd.f32 %v2037_v43, %v1890_v37  ;;  %v2098_v59 = vadd.f32 %v2097_v57, %v2083_v6  ;;  %v3114_v17 = vpop.f32.mrb[74].mxu1 }
 0x26e   :  { %v1893_v39 = vadd.f32 %v3114_v17, %v1699_v60  ;;  %v1853_v2 = vpop.f32.mrb[75].mxu1 }
 0x26f   :  { %v2099_v48 = vadd.f32 %v2098_v59, %v2084_v51  ;;  %v1892_v44 = vadd.f32 %v1853_v2, %v1698_v46 }
 0x270   :  { %v2087_v24 = vadd.f32 %v3170_v63, %v1893_v39 }
 0x271   :  { %v2086_v61 = vadd.f32 %v2047_v14, %v1892_v44  ;;  %v2100_v47 = vadd.f32 %v2099_v48, %v2085_v23  ;;  %v3117_v32 = vpop.f32.mrb[76].mxu1 }
 0x272   :  { %v1895_v49 = vadd.f32 %v3117_v32, %v1701_v7  ;;  %v1863_v12 = vpop.f32.mrb[77].mxu1 }
 0x273   :  { %v2101_v22 = vadd.f32 %v2100_v47, %v2086_v61  ;;  %v1894_v42 = vadd.f32 %v1863_v12, %v1700_v4 }
 0x274   :  { %v2089_v30 = vadd.f32 %v3173_v54, %v1895_v49 }
 0x275   :  { %v2088_v50 = vadd.f32 %v2057_v1, %v1894_v42  ;;  %v2102_v9 = vadd.f32 %v2101_v22, %v2087_v24  ;;  %v3120_v20 = vpop.f32.mrb[78].mxu1 }
 0x276   :  { %v1897_v35 = vadd.f32 %v3120_v20, %v1703_v5  ;;  %v1873_v43 = vpop.f32.mrb[79].mxu1 }
 0x277   :  { %v2103_v21 = vadd.f32 %v2102_v9, %v2088_v50  ;;  %v1896_v31 = vadd.f32 %v1873_v43, %v1702_v27 }
 0x279   :  { %v3176_v60 = vpop.f32.mrb[80].mxu1  ;;  %v2104_v16 = vadd.f32 %v2103_v21, %v2089_v30 }
 0x27a   :  { %v2091_v18 = vadd.f32 %v3176_v60, %v1897_v35  ;;  %v2067_v46 = vpop.f32.mrb[81].mxu1 }
 0x27b   :  { %v2090_v63 = vadd.f32 %v2067_v46, %v1896_v31 }
 0x27d   :  { %v2105_v14 = vadd.f32 %v2104_v16, %v2090_v63 }
 0x27f   :  { %v2106_v41 = vadd.f32 %v2105_v14, %v2091_v18  ;;  %v2173_v14 = vlaneseq }
 0x281   :  { %v2107_v52 = vrot.slane %v2106_v41, 4 }
 0x283   :  { %v2108_v7 = vadd.f32 %v2107_v52, %v2106_v41  ;;  %v2174_v41 = vshrl.u32 %v2173_v14, 7  ;;  %v2168_v52 = vld [vmem:[%s4737_s4] sm:$0x1] }
 0x285   :  { %v2109_v38 = vrot.slane %v2108_v7, 2 }
 0x287   :  { %v2110_v45 = vadd.f32 %v2109_v38, %v2108_v7  ;;  %v2175_v7 = vsub.s32 0, %v2174_v41 }
 0x289   :  { %v2111_v4 = vrot.slane %v2110_v45, 1 }
 0x28b   :  { %v2112_v54 = vadd.f32 %v2111_v4, %v2110_v45 }
 0x28d   :  { %v2113_v1 = vmul.f32 0.0078125, %v2112_v54 }
 0x28f   :  { %v4597_v33 = vsub.f32 %v4589_v3, %v2113_v1  ;;  %v4600_v5 = vsub.f32 %v4587_v34, %v2113_v1  ;;  %v4602_v27 = vsub.f32 %v2078_v13, %v2113_v1  ;;  %v4605_v55 = vsub.f32 %v4593_v29, %v2113_v1 }
 0x290   :  { %v4607_v26 = vsub.f32 %v2080_v58, %v2113_v1  ;;  %v4609_v25 = vsub.f32 %v2081_v10, %v2113_v1  ;;  %v4611_v40 = vsub.f32 %v2082_v8, %v2113_v1  ;;  %v4613_v28 = vsub.f32 %v2083_v6, %v2113_v1 }
 0x291   :  { %v4615_v53 = vsub.f32 %v2084_v51, %v2113_v1  ;;  %v4617_v3 = vsub.f32 %v2085_v23, %v2113_v1  ;;  %v4619_v0 = vsub.f32 %v2086_v61, %v2113_v1  ;;  %v4621_v34 = vsub.f32 %v2087_v24, %v2113_v1 }
 0x292   :  { %v4623_v13 = vsub.f32 %v2088_v50, %v2113_v1  ;;  %v4625_v29 = vsub.f32 %v2089_v30, %v2113_v1  ;;  %v4627_v58 = vsub.f32 %v2090_v63, %v2113_v1  ;;  %v4629_v10 = vsub.f32 %v2091_v18, %v2113_v1 }
 0x293   :  { %v2130_v36 = vmul.f32 %v4597_v33, %v4597_v33  ;;  %v2131_v19 = vmul.f32 %v4600_v5, %v4600_v5  ;;  %v2132_v6 = vmul.f32 %v4602_v27, %v4602_v27  ;;  %v2133_v56 = vmul.f32 %v4605_v55, %v4605_v55 }
 0x294   :  { %v2134_v15 = vmul.f32 %v4607_v26, %v4607_v26  ;;  %v2135_v57 = vmul.f32 %v4609_v25, %v4609_v25  ;;  %v2136_v23 = vmul.f32 %v4611_v40, %v4611_v40  ;;  %v2137_v59 = vmul.f32 %v4613_v28, %v4613_v28 }
 0x295   :  { %v2146_v8 = vadd.f32 %v2131_v19, %v2130_v36  ;;  %v2138_v39 = vmul.f32 %v4615_v53, %v4615_v53  ;;  %v2139_v48 = vmul.f32 %v4617_v3, %v4617_v3  ;;  %v2140_v24 = vmul.f32 %v4619_v0, %v4619_v0 }
 0x296   :  { %v2141_v47 = vmul.f32 %v4621_v34, %v4621_v34  ;;  %v2142_v49 = vmul.f32 %v4623_v13, %v4623_v13  ;;  %v2143_v22 = vmul.f32 %v4625_v29, %v4625_v29  ;;  %v2144_v30 = vmul.f32 %v4627_v58, %v4627_v58 }
 0x297   :  { %v2147_v62 = vadd.f32 %v2146_v8, %v2132_v6  ;;  %v2145_v9 = vmul.f32 %v4629_v10, %v4629_v10 }
 0x299   :  { %v2148_v11 = vadd.f32 %v2147_v62, %v2133_v56 }
 0x29b   :  { %v2149_v37 = vadd.f32 %v2148_v11, %v2134_v15  ;;  %v2384_v15 = vld [vmem:[%s4738_s5] ss:$0 sm:$0xff] }
 0x29d   :  { %v2150_v51 = vadd.f32 %v2149_v37, %v2135_v57 }
 0x29f   :  { %v2151_v17 = vadd.f32 %v2150_v51, %v2136_v23 }
 0x2a1   :  { %v2152_v2 = vadd.f32 %v2151_v17, %v2137_v59 }
 0x2a3   :  { %v2153_v44 = vadd.f32 %v2152_v2, %v2138_v39 }
 0x2a5   :  { %v2154_v61 = vadd.f32 %v2153_v44, %v2139_v48 }
 0x2a7   :  { %v2155_v32 = vadd.f32 %v2154_v61, %v2140_v24 }
 0x2a9   :  { %v2156_v12 = vadd.f32 %v2155_v32, %v2141_v47 }
 0x2ab   :  { %v2157_v42 = vadd.f32 %v2156_v12, %v2142_v49 }
 0x2ad   :  { %v2158_v50 = vadd.f32 %v2157_v42, %v2143_v22 }
 0x2af   :  { %v2159_v20 = vadd.f32 %v2158_v50, %v2144_v30 }
 0x2b1   :  { %v2160_v35 = vadd.f32 %v2159_v20, %v2145_v9 }
 0x2b3   :  { %v2161_v43 = vrot.slane %v2160_v35, 4 }
 0x2b5   :  { %v2162_v21 = vadd.f32 %v2161_v43, %v2160_v35 }
 0x2b7   :  { %v2163_v31 = vrot.slane %v2162_v21, 2 }
 0x2b9   :  { %v2164_v60 = vadd.f32 %v2163_v31, %v2162_v21 }
 0x2bb   :  { %v2165_v16 = vrot.slane %v2164_v60, 1 }
 0x2bd   :  { %v2166_v18 = vadd.f32 %v2165_v16, %v2164_v60 }
 0x2bf   :  { %v2167_v46 = vmul.f32 0.0078125, %v2166_v18 }
 0x2c1   :  { %v2169_v63 = vadd.f32 1e-05, %v2167_v46 }
 0x2c3   :  { %3490 = vrsqrt.f32 %v2169_v63 }
 0x2cd   :  { %v3491_v38 = vpop.eup %3490 }
 0x2ce   :  { %v2171_v45 = vmul.f32 %v3491_v38, %v2168_v52 }
 0x2d0   :  { %v2176_v4 = vrot.slane %v2171_v45, %v2175_v7 }
 0x2d2   :  { %v2178_v54 = vmul.f32 %v2176_v4, %v4597_v33  ;;  %v2179_v1 = vmul.f32 %v2176_v4, %v4600_v5  ;;  %v2180_v36 = vmul.f32 %v2176_v4, %v4602_v27  ;;  %v2181_v19 = vmul.f32 %v2176_v4, %v4605_v55 }
 0x2d3   :  { %v2182_v6 = vmul.f32 %v2176_v4, %v4607_v26  ;;  %v2183_v8 = vmul.f32 %v2176_v4, %v4609_v25  ;;  %v2184_v56 = vmul.f32 %v2176_v4, %v4611_v40  ;;  %v2185_v62 = vmul.f32 %v2176_v4, %v4613_v28 }
 0x2d4   :  { %v2186_v33 = vmul.f32 %v2176_v4, %v4615_v53  ;;  %v2187_v5 = vmul.f32 %v2176_v4, %v4617_v3  ;;  %v2188_v27 = vmul.f32 %v2176_v4, %v4619_v0  ;;  %v2189_v55 = vmul.f32 %v2176_v4, %v4621_v34 }
 0x2d5   :  { %v2190_v26 = vmul.f32 %v2176_v4, %v4623_v13  ;;  %v2191_v25 = vmul.f32 %v2176_v4, %v4625_v29  ;;  %v2192_v40 = vmul.f32 %v2176_v4, %v4627_v58  ;;  %v2193_v28 = vmul.f32 %v2176_v4, %v4629_v10 }
 0x2d6   :  { %v2201_v11 = vadd.f32 %v2384_v15, %v2178_v54  ;;  %v2202_v57 = vadd.f32 %v2384_v15, %v2179_v1  ;;  %v2203_v37 = vadd.f32 %v2384_v15, %v2180_v36  ;;  %v2204_v23 = vadd.f32 %v2384_v15, %v2181_v19 }
 0x2d7   :  { %v2205_v51 = vadd.f32 %v2384_v15, %v2182_v6  ;;  %v2206_v53 = vadd.f32 %v2384_v15, %v2183_v8  ;;  %v2207_v59 = vadd.f32 %v2384_v15, %v2184_v56  ;;  %v2208_v3 = vadd.f32 %v2384_v15, %v2185_v62 }
 0x2d8   :  { %v2209_v17 = vadd.f32 %v2384_v15, %v2186_v33  ;;  %v2210_v0 = vadd.f32 %v2384_v15, %v2187_v5  ;;  %v2211_v39 = vadd.f32 %v2384_v15, %v2188_v27  ;;  %v2212_v34 = vadd.f32 %v2384_v15, %v2189_v55  ;;  %2217 = vst [vmem:[%s4739_s6] sm:$0xff] %v2201_v11 }
 0x2d9   :  { %2218 = vst [vmem:[%s4739_s6 + $0x8] sm:$0xff] %v2202_v57  ;;  %2219 = vst [vmem:[%s4739_s6 + $0x10] sm:$0xff] %v2203_v37  ;;  %v2213_v13 = vadd.f32 %v2384_v15, %v2190_v26  ;;  %v2214_v29 = vadd.f32 %v2384_v15, %v2191_v25  ;;  %v2215_v58 = vadd.f32 %v2384_v15, %v2192_v40 }
 0x2da   :  { %2220 = vst [vmem:[%s4739_s6 + $0x18] sm:$0xff] %v2204_v23  ;;  %v2216_v10 = vadd.f32 %v2384_v15, %v2193_v28  ;;  %2221 = vst [vmem:[%s4739_s6 + $0x20] sm:$0xff] %v2205_v51 }
 0x2db   :  { %2222 = vst [vmem:[%s4739_s6 + $0x28] sm:$0xff] %v2206_v53  ;;  %2223 = vst [vmem:[%s4739_s6 + $0x30] sm:$0xff] %v2207_v59 }
 0x2dc   :  { %2224 = vst [vmem:[%s4739_s6 + $0x38] sm:$0xff] %v2208_v3  ;;  %2225 = vst [vmem:[%s4739_s6 + $0x40] sm:$0xff] %v2209_v17 }
 0x2dd   :  { %2226 = vst [vmem:[%s4739_s6 + $0x48] sm:$0xff] %v2210_v0  ;;  %2227 = vst [vmem:[%s4739_s6 + $0x50] sm:$0xff] %v2211_v39 }
 0x2de   :  { %2228 = vst [vmem:[%s4739_s6 + $0x58] sm:$0xff] %v2212_v34  ;;  %2229 = vst [vmem:[%s4739_s6 + $0x60] sm:$0xff] %v2213_v13 }
 0x2df   :  { %2230 = vst [vmem:[%s4739_s6 + $0x68] sm:$0xff] %v2214_v29  ;;  %2231 = vst [vmem:[%s4739_s6 + $0x70] sm:$0xff] %v2215_v58 }
 0x2e0   :  { %2232 = vst [vmem:[%s4739_s6 + $0x78] sm:$0xff] %v2216_v10 }

</bundles_post_ra>
